<compile_context>
chip_gen: v6e
topology: v6e:2x2x1
jax: 0.10.0
libtpu: 0.0.40
codegen_flags: <defaults>
</compile_context>

<pallas_src>
import jax
import jax.numpy as jnp
from jax.experimental import pallas as pl
from jax.experimental.pallas import tpu as pltpu

IN_DIM = 28 * 28       # 784
HID_DIM = 400
LATENT_DIM = 20

# lane-padded (multiples of 128) feature dims
IN_P = 896             # 7 * 128
HID_P = 512            # 4 * 128
LAT_P = 128            # 1 * 128


def _vae_kernel(x_ref, eps_ref,
                w1_ref, b1_ref,
                wmulv_ref, bmulv_ref,
                dw1_ref, db1_ref,
                dw2_ref, db2_ref,
                recon_ref, mulv_ref):
    """One batch tile of the full VAE forward; weights are VMEM-resident."""
    x = x_ref[...]                                          # (TB, IN_P) bf16

    # ---- encode: h1 = relu(x @ W1 + b1) ----
    h1 = jnp.dot(x, w1_ref[...],
                 preferred_element_type=jnp.float32) + b1_ref[...]
    h1 = jnp.maximum(h1, 0.0)                               # (TB, HID_P) f32

    # ---- fused mu / logvar head: one (HID_P, 2*LAT_P) matmul ----
    mulv = jnp.dot(h1.astype(jnp.bfloat16), wmulv_ref[...],
                   preferred_element_type=jnp.float32) + bmulv_ref[...]
    mu = mulv[:, :LAT_P]                                    # (TB, LAT_P) f32
    logvar = mulv[:, LAT_P:]                                # (TB, LAT_P) f32

    # ---- reparameterize: z = mu + eps * exp(0.5 * logvar) (all f32) ----
    std = jnp.exp(0.5 * logvar)
    z = mu + eps_ref[...] * std                             # (TB, LAT_P) f32

    # ---- decode ----
    h2 = jnp.dot(z.astype(jnp.bfloat16), dw1_ref[...],
                 preferred_element_type=jnp.float32) + db1_ref[...]
    h2 = jnp.maximum(h2, 0.0)                               # (TB, HID_P) f32

    logits = jnp.dot(h2.astype(jnp.bfloat16), dw2_ref[...],
                     preferred_element_type=jnp.float32) + db2_ref[...]
    recon_ref[...] = jax.nn.sigmoid(logits).astype(recon_ref.dtype)
    mulv_ref[...] = mulv                                    # (TB, 2*LAT_P) f32


def _pad2d(a, rows, cols, dtype):
    """Zero-pad a 2-D array to (rows, cols) and cast to dtype."""
    out = jnp.zeros((rows, cols), dtype)
    return out.at[:a.shape[0], :a.shape[1]].set(a.astype(dtype))


def prepare_vae_params(params):
    """One-time weight prep: pad to lane multiples, cast matmul weights to bf16,
    fuse the mu/logvar head.  Do this once, outside the per-step forward."""
    w1 = _pad2d(params["enc_w1"], IN_P, HID_P, jnp.bfloat16)
    b1 = _pad2d(params["enc_b1"], 1, HID_P, jnp.float32)
    wmu = _pad2d(params["enc_wmu"], HID_P, LAT_P, jnp.bfloat16)
    wlv = _pad2d(params["enc_wlv"], HID_P, LAT_P, jnp.bfloat16)
    wmulv = jnp.concatenate([wmu, wlv], axis=1)             # (HID_P, 2*LAT_P)
    bmu = _pad2d(params["enc_bmu"], 1, LAT_P, jnp.float32)
    blv = _pad2d(params["enc_blv"], 1, LAT_P, jnp.float32)
    bmulv = jnp.concatenate([bmu, blv], axis=1)             # (1, 2*LAT_P)
    dw1 = _pad2d(params["dec_w1"], LAT_P, HID_P, jnp.bfloat16)
    db1 = _pad2d(params["dec_b1"], 1, HID_P, jnp.float32)
    dw2 = _pad2d(params["dec_w2"], HID_P, IN_P, jnp.bfloat16)
    db2 = _pad2d(params["dec_b2"], 1, IN_P, jnp.float32)
    prepped = {
        "w1": w1, "b1": b1, "wmulv": wmulv, "bmulv": bmulv,
        "dw1": dw1, "db1": db1, "dw2": dw2, "db2": db2,
    }
    return jax.tree_util.tree_map(jax.device_put, prepped)


@jax.jit
def vae_forward(x, eps, prepped):
    """x: (B, 1, 28, 28) or (B, 784); eps: (B, LATENT_DIM) float32.
    `prepped` comes from prepare_vae_params()."""
    B = x.shape[0]
    x2d = x.reshape(B, IN_DIM).astype(jnp.bfloat16)
    eps = eps.astype(jnp.float32)

    # Batch tile: multiple of 8 sublanes, capped at 512 rows.  With
    # single-buffered bf16 weights (~2.2 MB) and bf16 x/recon the total VMEM
    # footprint stays well under the 32 MiB scoped limit on every generation.
    TB = min(512, max(8, ((B + 7) // 8) * 8))
    B_pad = ((B + TB - 1) // TB) * TB
    # Guarantee >= 2 grid steps so the parallel batch axis can shard across
    # both v7x TensorCores (harmless on single-TC v5e/v6e).
    if B_pad // TB < 2:
        if TB >= 16:
            TB //= 2                      # still a multiple of 8
        else:
            B_pad = 2 * TB                # one extra all-zero tile

    # ---- pad activations directly in their kernel dtypes (no extra f32 pass) ----
    xp = jnp.zeros((B_pad, IN_P), jnp.bfloat16).at[:B, :IN_DIM].set(x2d)
    ep = jnp.zeros((B_pad, LAT_P), jnp.float32).at[:B, :LATENT_DIM].set(eps)

    grid = (B_pad // TB,)
    tile_map = lambda i: (i, 0)    # per-batch-tile arrays
    const_map = lambda i: (0, 0)   # weights / biases: VMEM-resident
    single = pl.Buffered(1)        # constant index_map -> no 2nd buffer needed

    in_specs = [
        pl.BlockSpec((TB, IN_P), tile_map),                                  # x (bf16)
        pl.BlockSpec((TB, LAT_P), tile_map),                                 # eps (f32)
        pl.BlockSpec((IN_P, HID_P), const_map, pipeline_mode=single),        # enc w1
        pl.BlockSpec((1, HID_P), const_map, pipeline_mode=single),           # enc b1
        pl.BlockSpec((HID_P, 2 * LAT_P), const_map, pipeline_mode=single),   # wmu|wlv
        pl.BlockSpec((1, 2 * LAT_P), const_map, pipeline_mode=single),       # bmu|blv
        pl.BlockSpec((LAT_P, HID_P), const_map, pipeline_mode=single),       # dec w1
        pl.BlockSpec((1, HID_P), const_map, pipeline_mode=single),           # dec b1
        pl.BlockSpec((HID_P, IN_P), const_map, pipeline_mode=single),        # dec w2
        pl.BlockSpec((1, IN_P), const_map, pipeline_mode=single),            # dec b2
    ]
    out_specs = (
        pl.BlockSpec((TB, IN_P), tile_map),            # recon (bf16, padded)
        pl.BlockSpec((TB, 2 * LAT_P), tile_map),       # mu|logvar (f32, padded)
    )
    out_shapes = (
        jax.ShapeDtypeStruct((B_pad, IN_P), jnp.bfloat16),
        jax.ShapeDtypeStruct((B_pad, 2 * LAT_P), jnp.float32),
    )

    flops = 2 * B_pad * (IN_DIM * HID_DIM + 2 * HID_DIM * LATENT_DIM
                         + LATENT_DIM * HID_DIM + HID_DIM * IN_DIM)
    weight_bytes = 2 * (IN_P * HID_P + HID_P * 2 * LAT_P
                        + LAT_P * HID_P + HID_P * IN_P)
    io_bytes = B_pad * (2 * IN_P + 4 * LAT_P + 2 * IN_P + 4 * 2 * LAT_P)
    cost = pl.CostEstimate(flops=flops,
                           transcendentals=B_pad * (LATENT_DIM + IN_DIM),
                           bytes_accessed=weight_bytes + io_bytes)

    recon_p, mulv_p = pl.pallas_call(
        _vae_kernel,
        out_shape=out_shapes,
        grid=grid,
        in_specs=in_specs,
        out_specs=out_specs,
        compiler_params=pltpu.CompilerParams(
            dimension_semantics=("parallel",),
            vmem_limit_bytes=32 * 1024 * 1024),
        cost_estimate=cost,
    )(xp, ep,
      prepped["w1"], prepped["b1"],
      prepped["wmulv"], prepped["bmulv"],
      prepped["dw1"], prepped["db1"],
      prepped["dw2"], prepped["db2"])

    # slice padded outputs back to the module's shapes (f32 like the module)
    recon = recon_p[:B, :IN_DIM].astype(jnp.float32)
    mu = mulv_p[:B, :LATENT_DIM]
    logvar = mulv_p[:B, LAT_P:LAT_P + LATENT_DIM]
    return recon, mu, logvar


def _init_linear(key, fan_in, fan_out):
    """Deterministic PyTorch-style Linear init; weight returned as (in, out)."""
    kw, kb = jax.random.split(key)
    bound = 1.0 / jnp.sqrt(fan_in)
    w = jax.random.uniform(kw, (fan_in, fan_out), jnp.float32, -bound, bound)
    b = jax.random.uniform(kb, (1, fan_out), jnp.float32, -bound, bound)
    return w, b


def init_vae_params(key, latent_dim=LATENT_DIM):
    keys = jax.random.split(key, 5)
    w1, b1 = _init_linear(keys[0], IN_DIM, HID_DIM)
    wmu, bmu = _init_linear(keys[1], HID_DIM, latent_dim)
    wlv, blv = _init_linear(keys[2], HID_DIM, latent_dim)
    dw1, db1 = _init_linear(keys[3], latent_dim, HID_DIM)
    dw2, db2 = _init_linear(keys[4], HID_DIM, IN_DIM)
    return {
        "enc_w1": w1, "enc_b1": b1,
        "enc_wmu": wmu, "enc_bmu": bmu,
        "enc_wlv": wlv, "enc_blv": blv,
        "dec_w1": dw1, "dec_b1": db1,
        "dec_w2": dw2, "dec_b2": db2,
    }


def _reference_forward(x, eps, params):
    """Pure-JAX f32 reference mirroring the PyTorch module."""
    B = x.shape[0]
    x2d = x.reshape(B, IN_DIM)
    h1 = jnp.maximum(x2d @ params["enc_w1"] + params["enc_b1"], 0.0)
    mu = h1 @ params["enc_wmu"] + params["enc_bmu"]
    logvar = h1 @ params["enc_wlv"] + params["enc_blv"]
    z = mu + eps * jnp.exp(0.5 * logvar)
    h2 = jnp.maximum(z @ params["dec_w1"] + params["dec_b1"], 0.0)
    recon = jax.nn.sigmoid(h2 @ params["dec_w2"] + params["dec_b2"])
    return recon, mu, logvar


if __name__ == "__main__":
    key = jax.random.PRNGKey(0)
    k_param, k_x, k_eps = jax.random.split(key, 3)

    B = 4
    params = init_vae_params(k_param)
    prepped = prepare_vae_params(params)                           # one-time weight prep
    x = jax.random.uniform(k_x, (B, 1, 28, 28), jnp.float32)       # NCHW MNIST-like
    eps = jax.random.normal(k_eps, (B, LATENT_DIM), jnp.float32)   # randn_like(std)

    recon, mu, logvar = vae_forward(x, eps, prepped)
    jax.block_until_ready((recon, mu, logvar))

    # sanity check against f32 reference (kernel matmuls use bf16 operands with
    # f32 accumulation and recon is stored bf16 -> loosened tolerances).
    r_ref, mu_ref, lv_ref = _reference_forward(x, eps, params)
    assert recon.shape == (B, IN_DIM) and mu.shape == (B, LATENT_DIM)
    assert logvar.shape == (B, LATENT_DIM)
    assert jnp.allclose(recon, r_ref, atol=2e-2)
    assert jnp.allclose(mu, mu_ref, atol=2e-2)
    assert jnp.allclose(logvar, lv_ref, atol=2e-2)

    print("KERNEL_OK")
</pallas_src>

<mosaic_0001>
module attributes {stable_mosaic.version = 11 : i64} {
  func.func @_vae_kernel(%arg0: i32, %arg1: memref<8x896xbf16, #tpu.memory_space<vmem>>, %arg2: memref<8x128xf32, #tpu.memory_space<vmem>>, %arg3: memref<896x512xbf16, #tpu.memory_space<vmem>>, %arg4: memref<1x512xf32, #tpu.memory_space<vmem>>, %arg5: memref<512x256xbf16, #tpu.memory_space<vmem>>, %arg6: memref<1x256xf32, #tpu.memory_space<vmem>>, %arg7: memref<128x512xbf16, #tpu.memory_space<vmem>>, %arg8: memref<1x512xf32, #tpu.memory_space<vmem>>, %arg9: memref<512x896xbf16, #tpu.memory_space<vmem>>, %arg10: memref<1x896xf32, #tpu.memory_space<vmem>>, %arg11: memref<8x896xbf16, #tpu.memory_space<vmem>>, %arg12: memref<8x256xf32, #tpu.memory_space<vmem>>) attributes {dimension_semantics = [#tpu.dimension_semantics<parallel>], iteration_bounds = array<i64: 2>, scalar_prefetch = 0 : i64, scratch_operands = 0 : i64, tpu.core_type = #tpu.core_type<tc>, window_params = [{transform_indices = @transform_0, window_bounds = array<i64: 8, 896>}, {transform_indices = @transform_1, window_bounds = array<i64: 8, 128>}, {pipeline_mode = #tpu.pipeline_mode<synchronous>, transform_indices = @transform_2, window_bounds = array<i64: 896, 512>}, {pipeline_mode = #tpu.pipeline_mode<synchronous>, transform_indices = @transform_3, window_bounds = array<i64: 1, 512>}, {pipeline_mode = #tpu.pipeline_mode<synchronous>, transform_indices = @transform_4, window_bounds = array<i64: 512, 256>}, {pipeline_mode = #tpu.pipeline_mode<synchronous>, transform_indices = @transform_5, window_bounds = array<i64: 1, 256>}, {pipeline_mode = #tpu.pipeline_mode<synchronous>, transform_indices = @transform_6, window_bounds = array<i64: 128, 512>}, {pipeline_mode = #tpu.pipeline_mode<synchronous>, transform_indices = @transform_7, window_bounds = array<i64: 1, 512>}, {pipeline_mode = #tpu.pipeline_mode<synchronous>, transform_indices = @transform_8, window_bounds = array<i64: 512, 896>}, {pipeline_mode = #tpu.pipeline_mode<synchronous>, transform_indices = @transform_9, window_bounds = array<i64: 1, 896>}, {transform_indices = @transform_10, window_bounds = array<i64: 8, 896>}, {transform_indices = @transform_11, window_bounds = array<i64: 8, 256>}]} {
    %c0 = arith.constant 0 : index
    %c0_0 = arith.constant 0 : index
    %0 = vector.load %arg1[%c0, %c0_0] : memref<8x896xbf16, #tpu.memory_space<vmem>>, vector<8x896xbf16>
    %c0_1 = arith.constant 0 : index
    %c0_2 = arith.constant 0 : index
    %1 = vector.load %arg3[%c0_1, %c0_2] : memref<896x512xbf16, #tpu.memory_space<vmem>>, vector<896x512xbf16>
    %cst = arith.constant dense<0.000000e+00> : vector<8x512xf32>
    %2 = tpu.matmul %0, %1, %cst {dimension_numbers = #tpu.dot_dimension_numbers<[1], [0], [0], [1], [0, 0, 1, 1], [], []>} : vector<8x896xbf16>, vector<896x512xbf16>, vector<8x512xf32> -> vector<8x512xf32>
    %c0_3 = arith.constant 0 : index
    %c0_4 = arith.constant 0 : index
    %3 = vector.load %arg4[%c0_3, %c0_4] : memref<1x512xf32, #tpu.memory_space<vmem>>, vector<1x512xf32>
    %4 = vector.broadcast %3 : vector<1x512xf32> to vector<8x512xf32>
    %5 = arith.addf %2, %4 : vector<8x512xf32>
    %cst_5 = arith.constant 0.000000e+00 : f32
    %6 = vector.broadcast %cst_5 : f32 to vector<8x512xf32>
    %7 = arith.maximumf %5, %6 : vector<8x512xf32>
    %8 = arith.truncf %7 : vector<8x512xf32> to vector<8x512xbf16>
    %c0_6 = arith.constant 0 : index
    %c0_7 = arith.constant 0 : index
    %9 = vector.load %arg5[%c0_6, %c0_7] : memref<512x256xbf16, #tpu.memory_space<vmem>>, vector<512x256xbf16>
    %cst_8 = arith.constant dense<0.000000e+00> : vector<8x256xf32>
    %10 = tpu.matmul %8, %9, %cst_8 {dimension_numbers = #tpu.dot_dimension_numbers<[1], [0], [0], [1], [0, 0, 1, 1], [], []>} : vector<8x512xbf16>, vector<512x256xbf16>, vector<8x256xf32> -> vector<8x256xf32>
    %c0_9 = arith.constant 0 : index
    %c0_10 = arith.constant 0 : index
    %11 = vector.load %arg6[%c0_9, %c0_10] : memref<1x256xf32, #tpu.memory_space<vmem>>, vector<1x256xf32>
    %12 = vector.broadcast %11 : vector<1x256xf32> to vector<8x256xf32>
    %13 = arith.addf %10, %12 : vector<8x256xf32>
    %14 = vector.extract_strided_slice %13 {offsets = [0, 0], sizes = [8, 128], strides = [1, 1]} : vector<8x256xf32> to vector<8x128xf32>
    %15 = vector.extract_strided_slice %13 {offsets = [0, 128], sizes = [8, 128], strides = [1, 1]} : vector<8x256xf32> to vector<8x128xf32>
    %cst_11 = arith.constant 5.000000e-01 : f32
    %16 = vector.broadcast %cst_11 : f32 to vector<8x128xf32>
    %17 = arith.mulf %16, %15 : vector<8x128xf32>
    %18 = math.exp %17 : vector<8x128xf32>
    %c0_12 = arith.constant 0 : index
    %c0_13 = arith.constant 0 : index
    %19 = vector.load %arg2[%c0_12, %c0_13] : memref<8x128xf32, #tpu.memory_space<vmem>>, vector<8x128xf32>
    %20 = arith.mulf %19, %18 : vector<8x128xf32>
    %21 = arith.addf %14, %20 : vector<8x128xf32>
    %22 = arith.truncf %21 : vector<8x128xf32> to vector<8x128xbf16>
    %c0_14 = arith.constant 0 : index
    %c0_15 = arith.constant 0 : index
    %23 = vector.load %arg7[%c0_14, %c0_15] : memref<128x512xbf16, #tpu.memory_space<vmem>>, vector<128x512xbf16>
    %cst_16 = arith.constant dense<0.000000e+00> : vector<8x512xf32>
    %24 = tpu.matmul %22, %23, %cst_16 {dimension_numbers = #tpu.dot_dimension_numbers<[1], [0], [0], [1], [0, 0, 1, 1], [], []>} : vector<8x128xbf16>, vector<128x512xbf16>, vector<8x512xf32> -> vector<8x512xf32>
    %c0_17 = arith.constant 0 : index
    %c0_18 = arith.constant 0 : index
    %25 = vector.load %arg8[%c0_17, %c0_18] : memref<1x512xf32, #tpu.memory_space<vmem>>, vector<1x512xf32>
    %26 = vector.broadcast %25 : vector<1x512xf32> to vector<8x512xf32>
    %27 = arith.addf %24, %26 : vector<8x512xf32>
    %cst_19 = arith.constant 0.000000e+00 : f32
    %28 = vector.broadcast %cst_19 : f32 to vector<8x512xf32>
    %29 = arith.maximumf %27, %28 : vector<8x512xf32>
    %30 = arith.truncf %29 : vector<8x512xf32> to vector<8x512xbf16>
    %c0_20 = arith.constant 0 : index
    %c0_21 = arith.constant 0 : index
    %31 = vector.load %arg9[%c0_20, %c0_21] : memref<512x896xbf16, #tpu.memory_space<vmem>>, vector<512x896xbf16>
    %cst_22 = arith.constant dense<0.000000e+00> : vector<8x896xf32>
    %32 = tpu.matmul %30, %31, %cst_22 {dimension_numbers = #tpu.dot_dimension_numbers<[1], [0], [0], [1], [0, 0, 1, 1], [], []>} : vector<8x512xbf16>, vector<512x896xbf16>, vector<8x896xf32> -> vector<8x896xf32>
    %c0_23 = arith.constant 0 : index
    %c0_24 = arith.constant 0 : index
    %33 = vector.load %arg10[%c0_23, %c0_24] : memref<1x896xf32, #tpu.memory_space<vmem>>, vector<1x896xf32>
    %34 = vector.broadcast %33 : vector<1x896xf32> to vector<8x896xf32>
    %35 = arith.addf %32, %34 : vector<8x896xf32>
    %36 = arith.negf %35 : vector<8x896xf32>
    %37 = math.exp %36 : vector<8x896xf32>
    %cst_25 = arith.constant 1.000000e+00 : f32
    %38 = vector.broadcast %cst_25 : f32 to vector<8x896xf32>
    %39 = arith.addf %38, %37 : vector<8x896xf32>
    %40 = arith.divf %38, %39 : vector<8x896xf32>
    %41 = arith.truncf %40 : vector<8x896xf32> to vector<8x896xbf16>
    %c0_26 = arith.constant 0 : index
    %c0_27 = arith.constant 0 : index
    %42 = vector.load %arg11[%c0_26, %c0_27] : memref<8x896xbf16, #tpu.memory_space<vmem>>, vector<8x896xbf16>
    tpu.vector_store %arg11[%c0_26, %c0_27], %41 {strides = array<i32>} : memref<8x896xbf16, #tpu.memory_space<vmem>>, vector<8x896xbf16>,
    %c0_28 = arith.constant 0 : index
    %c0_29 = arith.constant 0 : index
    %43 = vector.load %arg12[%c0_28, %c0_29] : memref<8x256xf32, #tpu.memory_space<vmem>>, vector<8x256xf32>
    tpu.vector_store %arg12[%c0_28, %c0_29], %13 {strides = array<i32>} : memref<8x256xf32, #tpu.memory_space<vmem>>, vector<8x256xf32>,
    return
  }
  func.func @transform_0(%arg0: i32) -> (i32, i32) {
    %c0_i32 = arith.constant 0 : i32
    %c0_i32_0 = arith.constant 0 : i32
    return %arg0, %c0_i32 : i32, i32
  }
  func.func @transform_1(%arg0: i32) -> (i32, i32) {
    %c0_i32 = arith.constant 0 : i32
    %c0_i32_0 = arith.constant 0 : i32
    return %arg0, %c0_i32 : i32, i32
  }
  func.func @transform_2(%arg0: i32) -> (i32, i32) {
    %c0_i32 = arith.constant 0 : i32
    %c0_i32_0 = arith.constant 0 : i32
    %c0_i32_1 = arith.constant 0 : i32
    return %c0_i32, %c0_i32_0 : i32, i32
  }
  func.func @transform_3(%arg0: i32) -> (i32, i32) {
    %c0_i32 = arith.constant 0 : i32
    %c0_i32_0 = arith.constant 0 : i32
    %c0_i32_1 = arith.constant 0 : i32
    return %c0_i32, %c0_i32_0 : i32, i32
  }
  func.func @transform_4(%arg0: i32) -> (i32, i32) {
    %c0_i32 = arith.constant 0 : i32
    %c0_i32_0 = arith.constant 0 : i32
    %c0_i32_1 = arith.constant 0 : i32
    return %c0_i32, %c0_i32_0 : i32, i32
  }
  func.func @transform_5(%arg0: i32) -> (i32, i32) {
    %c0_i32 = arith.constant 0 : i32
    %c0_i32_0 = arith.constant 0 : i32
    %c0_i32_1 = arith.constant 0 : i32
    return %c0_i32, %c0_i32_0 : i32, i32
  }
  func.func @transform_6(%arg0: i32) -> (i32, i32) {
    %c0_i32 = arith.constant 0 : i32
    %c0_i32_0 = arith.constant 0 : i32
    %c0_i32_1 = arith.constant 0 : i32
    return %c0_i32, %c0_i32_0 : i32, i32
  }
  func.func @transform_7(%arg0: i32) -> (i32, i32) {
    %c0_i32 = arith.constant 0 : i32
    %c0_i32_0 = arith.constant 0 : i32
    %c0_i32_1 = arith.constant 0 : i32
    return %c0_i32, %c0_i32_0 : i32, i32
  }
  func.func @transform_8(%arg0: i32) -> (i32, i32) {
    %c0_i32 = arith.constant 0 : i32
    %c0_i32_0 = arith.constant 0 : i32
    %c0_i32_1 = arith.constant 0 : i32
    return %c0_i32, %c0_i32_0 : i32, i32
  }
  func.func @transform_9(%arg0: i32) -> (i32, i32) {
    %c0_i32 = arith.constant 0 : i32
    %c0_i32_0 = arith.constant 0 : i32
    %c0_i32_1 = arith.constant 0 : i32
    return %c0_i32, %c0_i32_0 : i32, i32
  }
  func.func @transform_10(%arg0: i32) -> (i32, i32) {
    %c0_i32 = arith.constant 0 : i32
    %c0_i32_0 = arith.constant 0 : i32
    return %arg0, %c0_i32 : i32, i32
  }
  func.func @transform_11(%arg0: i32) -> (i32, i32) {
    %c0_i32 = arith.constant 0 : i32
    %c0_i32_0 = arith.constant 0 : i32
    return %arg0, %c0_i32 : i32, i32
  }
}

</mosaic_0001>

<bundles_post_ra>
// kernel: vae_forward.1
= control target key start
LH: loop header
LB: loop body
LE: loop exit
PB: predicated region body
PF: predicated region fallthrough
CT: control target
= control target key end

     0   :  { %17 = vsyncpa [#allocation3], 0  ;;  %s6965_s0 = inlined_call_operand.vmem [shape: bf16[16,896], index: 0, kind: input, shape index: {}]   ;;  %s6966_s1 = inlined_call_operand.vmem [shape: f32[16,128], index: 1, kind: input, shape index: {}]   ;;  %s6967_s2 = inlined_call_operand.hbm [shape: bf16[896,512], index: 2, kind: input, shape index: {}]   ;;  %s6968_s3 = inlined_call_operand.vmem [shape: f32[1,512], index: 3, kind: input, shape index: {}]   ;;  %s6969_s4 = inlined_call_operand.hbm [shape: bf16[512,256], index: 4, kind: input, shape index: {}]   ;;  %s6970_s5 = inlined_call_operand.vmem [shape: f32[1,256], index: 5, kind: input, shape index: {}]   ;;  %s6971_s6 = inlined_call_operand.vmem [shape: bf16[128,512], index: 6, kind: input, shape index: {}]   ;;  %s6972_s7 = inlined_call_operand.vmem [shape: f32[1,512], index: 7, kind: input, shape index: {}]   ;;  %s6973_s8 = inlined_call_operand.hbm [shape: bf16[512,896], index: 8, kind: input, shape index: {}]   ;;  %s6974_s9 = inlined_call_operand.vmem [shape: f32[1,896], index: 9, kind: input, shape index: {}]   ;;  %s6975_s10 = inlined_call_operand.vmem [shape: bf16[16,896], index: 10, kind: output, shape index: {0}]   ;;  %s6976_s11 = inlined_call_operand.vmem [shape: f32[16,256], index: 11, kind: output, shape index: {1}]  }
   0x1   :  { %18 = vsyncpa [#allocation5], 0  ;;  %s6639_s17 = smov 0  }
   0x2 LB: > { %s6569_s18 = smov [#allocation4]   ;;  %s6645_s20 = sadd.s32 4294967295, %s6567_s17   ;;  %s6567_s17 = sphi %s6639_s17, %s24_s17  }
   0x3   : > { %s329_s19 = sshll.u32 %s6569_s18, 4  ;;  %p4963_p0 = scmp.ge.s32.totalorder %s6567_s17, 1  ;;  %s330_s19 = int_to_ptr.vmem [resolvable:$true] %s329_s19 }
   0x4   : > { %p301_p1 = scmp.lt.s32.totalorder %s6567_s17, 3  ;;  %p5613_p2 = scmp.eq.s32.totalorder %s6645_s20, 0 }
   0x5   : > { %s6570_s22 = smov [#allocation2]   ;;  %s6571_s25 = smov [#allocation6]  }
   0x6   : > { %p6650_p3 = pnand %p4963_p0, %p301_p1  ;;  %s313_s23 = sshll.u32 %s6570_s22, 4  ;;  %s6656_s23 = int_to_ptr.vmem [resolvable:$true] %s313_s23 }
   0x7   : > { %s6664_s26 = sshll.u32 %s6571_s25, 4  ;;  %s6486_s27 = scalar_lea.vmem %s330_s19, 8192  ;;  %s352_s26 = int_to_ptr.vmem [resolvable:$true] %s6664_s26 }
   0x8   : > { %p5603_p4 = pneg %p6650_p3  ;;  %p6487_p7 = scmp.ne.s32.totalorder %s330_s19, %s6486_s27 }
   0x9   : > { %p6494_p10 = scmp.lt.s32.totalorder %s330_s19, %s330_s19  ;;  %p6495_p11 = scmp.lt.s32.totalorder %s6486_s27, %s6486_s27 }
   0xa   : > { %p6660_p5 = pnand %p5613_p2, %p5603_p4 }
   0xb   : > { %p6496_p12 = por %p6495_p11, %p6494_p10 }
   0xc   : > { %p6477_p6 = pneg %p6660_p5 }
   0xe   : > { %p6489_p8 = pnand %p6487_p7, %p6477_p6 }
  0x10   : > { %p6490_p9 = pneg %p6489_p8 }
  0x12   : > { %p6497_p13 = pnand %p6496_p12, %p6490_p9 }
  0x14   : > { %6500 = shalt.err (!%p6497_p13)
}
  0x15   : > { %s6572_s28 = smov 128   ;;  %s6573_s29 = smov 8  }
  0x16   : > { %5609 = dma.hbm_to_vmem [thread:$0]  (!%p6660_p5), %s6969_s4, 8192, %s330_s19, [#allocation5], %s6572_s28, %s6572_s28, %s6573_s29  }
  0x17   : > { %s6512_s13 = scalar_lea.vmem %s6656_s23, 28672  ;;  %p6520_p7 = scmp.lt.s32.totalorder %s6656_s23, %s6656_s23 }
  0x18   : > { %p6513_p0 = scmp.ne.s32.totalorder %s6656_s23, %s6512_s13  ;;  %p6521_p8 = scmp.lt.s32.totalorder %s6512_s13, %s6512_s13 }
  0x1a   : > { %p6515_p1 = pnand %p6513_p0, %p6477_p6  ;;  %p6522_p9 = por %p6521_p8, %p6520_p7 }
  0x1c   : > { %p6516_p4 = pneg %p6515_p1 }
  0x1e   : > { %p6523_p10 = pnand %p6522_p9, %p6516_p4 }
  0x20   : > { %6526 = shalt.err (!%p6523_p10)
}
  0x21   : > { %s6574_s14 = smov 256   ;;  %s6575_s15 = smov 16  }
  0x22   : > { %5606 = dma.hbm_to_vmem [thread:$0]  (!%p6660_p5), %s6967_s2, 28672, %s6656_s23, [#allocation3], %s6574_s14, %s6574_s14, %s6575_s15  }
  0x23   : > { %s6538_s19 = scalar_lea.vmem %s352_s26, 28672  ;;  %p6546_p0 = scmp.lt.s32.totalorder %s352_s26, %s352_s26 }
  0x24   : > { %p6539_p11 = scmp.ne.s32.totalorder %s352_s26, %s6538_s19  ;;  %p6547_p1 = scmp.lt.s32.totalorder %s6538_s19, %s6538_s19 }
  0x26   : > { %p6541_p12 = pnand %p6539_p11, %p6477_p6  ;;  %p6548_p4 = por %p6547_p1, %p6546_p0 }
  0x28   : > { %p6542_p13 = pneg %p6541_p12 }
  0x2a   : > { %p6549_p7 = pnand %p6548_p4, %p6542_p13 }
  0x2c   : > { %6552 = shalt.err (!%p6549_p7)
}
  0x2d   : > { %s6576_s22 = smov 448   ;;  %s6577_s25 = smov 28  }
  0x2e   : > { %5612 = dma.hbm_to_vmem [thread:$0]  (!%p6660_p5), %s6973_s8, 28672, %s352_s26, [#allocation5], %s6576_s22, %s6576_s22, %s6577_s25  }
  0x2f   : > { %385 = sbr.rel (%p6650_p3) target bundleno = 1304 (0x518), region = 60 }
  0x34   : > { %6558 = dma.done.wait (%p5613_p2), [#allocation3], 28672  }
  0x35   : > { %6560 = vsyncadd (%p5613_p2), [#allocation3], 4294938624 }
  0x36   : > { %6562 = dma.done.wait (%p5613_p2), [#allocation5], 36864  }
  0x37   : > { %6564 = vsyncadd (%p5613_p2), [#allocation5], 4294930432  ;;  %v5637_v0 = vld [vmem:[#allocation2 + $0xe4] ss:$16 sps:$4 sm:$0xff]   ;;  %v5641_v2 = vld [vmem:[#allocation2 + $0xe0] ss:$16 sps:$4 sm:$0xff]  }
  0x38   : > { %v5639_v1 = vld [vmem:[#allocation2 + $0x2e4] ss:$16 sps:$4 sm:$0xff]   ;;  %1857 = vmatprep.subr.bf16.mxu0 %v5637_v0  ;;  %v5642_v3 = vld [vmem:[#allocation2 + $0x2e0] ss:$16 sps:$4 sm:$0xff]   ;;  %p442_p2 = scmp.lt.s32.totalorder %s6645_s20, 1 }
  0x39   : > { %1898 = vmatprep.subr.bf16.mxu1 %v5639_v1  ;;  %v5643_v4 = vld [vmem:[#allocation2 + $0xc4] ss:$16 sps:$4 sm:$0xff]   ;;  %1858 = vmatpush1.bf16.msra.mxu0 %v5641_v2  ;;  %v5647_v6 = vld [vmem:[#allocation2 + $0xc0] ss:$16 sps:$4 sm:$0xff]  }
  0x3a   : > { %1899 = vmatpush1.bf16.msra.mxu1 %v5642_v3  ;;  %v5645_v5 = vld [vmem:[#allocation2 + $0x2c4] ss:$16 sps:$4 sm:$0xff]   ;;  %1859 = vmatprep.subr.bf16.mxu0 %v5643_v4  ;;  %v5648_v7 = vld [vmem:[#allocation2 + $0x2c0] ss:$16 sps:$4 sm:$0xff]   ;;  %s6980_s20 = smov (!%p442_p2, %s6645_s20), 1 }
  0x3b   : > { %1900 = vmatprep.subr.bf16.mxu1 %v5645_v5  ;;  %v5649_v8 = vld [vmem:[#allocation2 + $0xa4] ss:$16 sps:$4 sm:$0xff]   ;;  %v5653_v10 = vld [vmem:[#allocation2 + $0xa0] ss:$16 sps:$4 sm:$0xff]   ;;  %s5590_s21 = smul.u32 28, %s6980_s20  ;;  %s5541_s14 = sshll.u32 %s6980_s20, 4 }
  0x3c   : > { %v5651_v9 = vld [vmem:[#allocation2 + $0x2a4] ss:$16 sps:$4 sm:$0xff]   ;;  %v5654_v11 = vld [vmem:[#allocation2 + $0x2a0] ss:$16 sps:$4 sm:$0xff]   ;;  %s460_s18 = scalar_lea.vmem %s6976_s11, %s5541_s14  ;;  %s4973_s19 = sshll.u32 %s6980_s20, 3 }
  0x3d   : > { %1860 = vmatpush1.bf16.msra.mxu0 %v5647_v6  ;;  %v5655_v12 = vld [vmem:[#allocation2 + $0x84] ss:$16 sps:$4 sm:$0xff]   ;;  %v5659_v14 = vld [vmem:[#allocation2 + $0x80] ss:$16 sps:$4 sm:$0xff]   ;;  %s6718_s26 = scalar_lea.vmem %s6965_s0, %s5590_s21  ;;  %s450_s27 = scalar_lea.vmem %s6966_s1, %s4973_s19 }
  0x3e   : > { %1901 = vmatpush1.bf16.msra.mxu1 %v5648_v7  ;;  %1861 = vmatprep.subr.bf16.mxu0 %v5649_v8  ;;  %v5657_v13 = vld [vmem:[#allocation2 + $0x284] ss:$16 sps:$4 sm:$0xff]   ;;  %v5660_v15 = vld [vmem:[#allocation2 + $0x280] ss:$16 sps:$4 sm:$0xff]   ;;  %v463_v48 = vld [vmem:[%s6718_s26 + $0x8] sm:$0xff]  ;;  %s6946_s12 = scalar_lea.vmem %s6975_s10, %s5590_s21 }
  0x3f   : > { %1902 = vmatprep.subr.bf16.mxu1 %v5651_v9  ;;  %v5661_v16 = vld [vmem:[#allocation2 + $0x64] ss:$16 sps:$4 sm:$0xff]   ;;  %v5665_v18 = vld [vmem:[#allocation2 + $0x60] ss:$16 sps:$4 sm:$0xff]   ;;  %v6724_v51 = vcombine.high %v463_v48, %v463_v48  ;;  %v6730_v7 = vcombine.low %v463_v48, %v463_v48  ;;  %v5797_v48 = vld [vmem:[#allocation2 + $0xcc] ss:$16 sps:$4 sm:$0xff]  }
  0x40   : > { %v5663_v17 = vld [vmem:[#allocation2 + $0x264] ss:$16 sps:$4 sm:$0xff]   ;;  %v5666_v19 = vld [vmem:[#allocation2 + $0x260] ss:$16 sps:$4 sm:$0xff]  }
  0x41   : > { %1862 = vmatpush1.bf16.msra.mxu0 %v5653_v10  ;;  %v5667_v20 = vld [vmem:[#allocation2 + $0x44] ss:$16 sps:$4 sm:$0xff]   ;;  %v5671_v22 = vld [vmem:[#allocation2 + $0x40] ss:$16 sps:$4 sm:$0xff]   ;;  %1930 = vmatprep.mubr.bf16.mxu1 %v6724_v51 }
  0x42   : > { %1903 = vmatpush1.bf16.msra.mxu1 %v5654_v11  ;;  %1863 = vmatprep.subr.bf16.mxu0 %v5655_v12  ;;  %v5669_v21 = vld [vmem:[#allocation2 + $0x244] ss:$16 sps:$4 sm:$0xff]   ;;  %v5672_v23 = vld [vmem:[#allocation2 + $0x240] ss:$16 sps:$4 sm:$0xff]  }
  0x43   : > { %1904 = vmatprep.subr.bf16.mxu1 %v5657_v13  ;;  %v5673_v24 = vld [vmem:[#allocation2 + $0x24] ss:$16 sps:$4 sm:$0xff]   ;;  %v5677_v26 = vld [vmem:[#allocation2 + $0x20] ss:$16 sps:$4 sm:$0xff]  }
  0x44   : > { %v5675_v25 = vld [vmem:[#allocation2 + $0x224] ss:$16 sps:$4 sm:$0xff]   ;;  %v5678_v27 = vld [vmem:[#allocation2 + $0x220] ss:$16 sps:$4 sm:$0xff]  }
  0x45   : > { %1864 = vmatpush1.bf16.msra.mxu0 %v5659_v14  ;;  %v5679_v28 = vld [vmem:[#allocation2 + $0x4] ss:$16 sps:$4 sm:$0xff]   ;;  %v5683_v30 = vld [vmem:[#allocation2] ss:$16 sps:$4 sm:$0xff]  }
  0x46   : > { %1905 = vmatpush1.bf16.msra.mxu1 %v5660_v15  ;;  %1865 = vmatprep.subr.bf16.mxu0 %v5661_v16  ;;  %v5681_v29 = vld [vmem:[#allocation2 + $0x204] ss:$16 sps:$4 sm:$0xff]   ;;  %v5684_v31 = vld [vmem:[#allocation2 + $0x200] ss:$16 sps:$4 sm:$0xff]   ;;  %v6578_v16 = vmov 0  }
  0x47   : > { %1906 = vmatprep.subr.bf16.mxu1 %v5663_v17  ;;  %v5685_v32 = vld [vmem:[#allocation2 + $0x1e4] ss:$16 sps:$4 sm:$0xff]   ;;  %v5689_v34 = vld [vmem:[#allocation2 + $0x1e0] ss:$16 sps:$4 sm:$0xff]  }
  0x48   : > { %v5687_v33 = vld [vmem:[#allocation2 + $0x3e4] ss:$16 sps:$4 sm:$0xff]   ;;  %v5690_v35 = vld [vmem:[#allocation2 + $0x3e0] ss:$16 sps:$4 sm:$0xff]  }
  0x49   : > { %1866 = vmatpush1.bf16.msra.mxu0 %v5665_v18  ;;  %v5691_v36 = vld [vmem:[#allocation2 + $0x1c4] ss:$16 sps:$4 sm:$0xff]   ;;  %v5695_v38 = vld [vmem:[#allocation2 + $0x1c0] ss:$16 sps:$4 sm:$0xff]  }
  0x4a   : > { %1907 = vmatpush1.bf16.msra.mxu1 %v5666_v19  ;;  %1867 = vmatprep.subr.bf16.mxu0 %v5667_v20  ;;  %v5693_v37 = vld [vmem:[#allocation2 + $0x3c4] ss:$16 sps:$4 sm:$0xff]   ;;  %v5696_v39 = vld [vmem:[#allocation2 + $0x3c0] ss:$16 sps:$4 sm:$0xff]  }
  0x4b   : > { %1908 = vmatprep.subr.bf16.mxu1 %v5669_v21  ;;  %v5697_v40 = vld [vmem:[#allocation2 + $0x1a4] ss:$16 sps:$4 sm:$0xff]   ;;  %v5701_v42 = vld [vmem:[#allocation2 + $0x1a0] ss:$16 sps:$4 sm:$0xff]  }
  0x4c   : > { %v5699_v41 = vld [vmem:[#allocation2 + $0x3a4] ss:$16 sps:$4 sm:$0xff]   ;;  %v5702_v43 = vld [vmem:[#allocation2 + $0x3a0] ss:$16 sps:$4 sm:$0xff]  }
  0x4d   : > { %1868 = vmatpush1.bf16.msra.mxu0 %v5671_v22  ;;  %v5703_v44 = vld [vmem:[#allocation2 + $0x184] ss:$16 sps:$4 sm:$0xff]   ;;  %v5707_v49 = vld [vmem:[#allocation2 + $0x180] ss:$16 sps:$4 sm:$0xff]  }
  0x4e   : > { %1909 = vmatpush1.bf16.msra.mxu1 %v5672_v23  ;;  %1869 = vmatprep.subr.bf16.mxu0 %v5673_v24  ;;  %v5705_v45 = vld [vmem:[#allocation2 + $0x384] ss:$16 sps:$4 sm:$0xff]   ;;  %v5708_v50 = vld [vmem:[#allocation2 + $0x380] ss:$16 sps:$4 sm:$0xff]  }
  0x4f   : > { %1910 = vmatprep.subr.bf16.mxu1 %v5675_v25  ;;  %v462_v46 = vld [vmem:[%s6718_s26] sm:$0xff] }
  0x50   : > { %v6721_v47 = vcombine.high %v462_v46, %v462_v46  ;;  %v5709_v52 = vld [vmem:[#allocation2 + $0x164] ss:$16 sps:$4 sm:$0xff]   ;;  %v5713_v54 = vld [vmem:[#allocation2 + $0x160] ss:$16 sps:$4 sm:$0xff]   ;;  %v6728_v6 = vcombine.low %v462_v46, %v462_v46 }
  0x51   : > { %1870 = vmatpush1.bf16.msra.mxu0 %v5677_v26  ;;  %v5711_v53 = vld [vmem:[#allocation2 + $0x364] ss:$16 sps:$4 sm:$0xff]   ;;  %v5714_v55 = vld [vmem:[#allocation2 + $0x360] ss:$16 sps:$4 sm:$0xff]  }
  0x52   : > { %1911 = vmatpush1.bf16.msra.mxu1 %v5678_v27  ;;  %1871 = vmatprep.subr.bf16.mxu0 %v5679_v28  ;;  %v5715_v56 = vld [vmem:[#allocation2 + $0x144] ss:$16 sps:$4 sm:$0xff]   ;;  %v5719_v58 = vld [vmem:[#allocation2 + $0x140] ss:$16 sps:$4 sm:$0xff]  }
  0x53   : > { %1912 = vmatprep.subr.bf16.mxu1 %v5681_v29  ;;  %1889 = vmatprep.mubr.bf16.mxu0 %v6721_v47  ;;  %v5717_v57 = vld [vmem:[#allocation2 + $0x344] ss:$16 sps:$4 sm:$0xff]   ;;  %v5720_v59 = vld [vmem:[#allocation2 + $0x340] ss:$16 sps:$4 sm:$0xff]  }
  0x54   : > { %v5721_v60 = vld [vmem:[#allocation2 + $0x124] ss:$16 sps:$4 sm:$0xff]   ;;  %v5725_v62 = vld [vmem:[#allocation2 + $0x120] ss:$16 sps:$4 sm:$0xff]  }
  0x55   : > { %1872 = vmatpush1.bf16.msra.mxu0 %v5683_v30  ;;  %v5723_v61 = vld [vmem:[#allocation2 + $0x324] ss:$16 sps:$4 sm:$0xff]   ;;  %v5726_v63 = vld [vmem:[#allocation2 + $0x320] ss:$16 sps:$4 sm:$0xff]  }
  0x56   : > { %1913 = vmatpush1.bf16.msra.mxu1 %v5684_v31  ;;  %1873 = vmatprep.subr.bf16.mxu0 %v5685_v32  ;;  %v5727_v0 = vld [vmem:[#allocation2 + $0x104] ss:$16 sps:$4 sm:$0xff]   ;;  %v5731_v2 = vld [vmem:[#allocation2 + $0x100] ss:$16 sps:$4 sm:$0xff]  }
  0x57   : > { %1914 = vmatprep.subr.bf16.mxu1 %v5687_v33  ;;  %v5729_v1 = vld [vmem:[#allocation2 + $0x304] ss:$16 sps:$4 sm:$0xff]   ;;  %v5732_v3 = vld [vmem:[#allocation2 + $0x300] ss:$16 sps:$4 sm:$0xff]  }
  0x58   : > { %v5739_v4 = vld [vmem:[#allocation2 + $0x4e4] ss:$16 sps:$4 sm:$0xff]   ;;  %v5737_v8 = vld [vmem:[#allocation2 + $0x4e0] ss:$16 sps:$4 sm:$0xff]  }
  0x59   : > { %1874 = vmatpush2.bf16.msra.mxu0 %v5689_v34  ;;  %v5742_v5 = vld [vmem:[#allocation2 + $0x6e4] ss:$16 sps:$4 sm:$0xff]   ;;  %v5740_v9 = vld [vmem:[#allocation2 + $0x6e0] ss:$16 sps:$4 sm:$0xff]  }
  0x5a   : > { %1915 = vmatpush2.bf16.msra.mxu1 %v5690_v35  ;;  %1875 = vmatprep.subr.bf16.mxu0 %v5691_v36  ;;  %v5745_v10 = vld [vmem:[#allocation2 + $0x4c4] ss:$16 sps:$4 sm:$0xff]   ;;  %v5743_v12 = vld [vmem:[#allocation2 + $0x4c0] ss:$16 sps:$4 sm:$0xff]  }
  0x5b   : > { %1916 = vmatprep.subr.bf16.mxu1 %v5693_v37  ;;  %v5748_v11 = vld [vmem:[#allocation2 + $0x6c4] ss:$16 sps:$4 sm:$0xff]   ;;  %v5746_v13 = vld [vmem:[#allocation2 + $0x6c0] ss:$16 sps:$4 sm:$0xff]  }
  0x5c   : > { %v5751_v14 = vld [vmem:[#allocation2 + $0x4a4] ss:$16 sps:$4 sm:$0xff]   ;;  %v5749_v17 = vld [vmem:[#allocation2 + $0x4a0] ss:$16 sps:$4 sm:$0xff]  }
  0x5d   : > { %1876 = vmatpush2.bf16.msra.mxu0 %v5695_v38  ;;  %v5754_v15 = vld [vmem:[#allocation2 + $0x6a4] ss:$16 sps:$4 sm:$0xff]   ;;  %v5752_v18 = vld [vmem:[#allocation2 + $0x6a0] ss:$16 sps:$4 sm:$0xff]  }
  0x5e   : > { %1917 = vmatpush2.bf16.msra.mxu1 %v5696_v39  ;;  %1877 = vmatprep.subr.bf16.mxu0 %v5697_v40  ;;  %v5757_v19 = vld [vmem:[#allocation2 + $0x484] ss:$16 sps:$4 sm:$0xff]   ;;  %v5755_v21 = vld [vmem:[#allocation2 + $0x480] ss:$16 sps:$4 sm:$0xff]  }
  0x5f   : > { %1918 = vmatprep.subr.bf16.mxu1 %v5699_v41  ;;  %v5760_v20 = vld [vmem:[#allocation2 + $0x684] ss:$16 sps:$4 sm:$0xff]   ;;  %v5758_v22 = vld [vmem:[#allocation2 + $0x680] ss:$16 sps:$4 sm:$0xff]  }
  0x60   : > { %v5763_v23 = vld [vmem:[#allocation2 + $0x464] ss:$16 sps:$4 sm:$0xff]   ;;  %v5761_v25 = vld [vmem:[#allocation2 + $0x460] ss:$16 sps:$4 sm:$0xff]  }
  0x61   : > { %1878 = vmatpush2.bf16.msra.mxu0 %v5701_v42  ;;  %v5766_v24 = vld [vmem:[#allocation2 + $0x664] ss:$16 sps:$4 sm:$0xff]   ;;  %v5764_v26 = vld [vmem:[#allocation2 + $0x660] ss:$16 sps:$4 sm:$0xff]   ;;  %v5791_v42 = vld [vmem:[#allocation2 + $0xec] ss:$16 sps:$4 sm:$0xff]  }
  0x62   : > { %1919 = vmatpush2.bf16.msra.mxu1 %v5702_v43  ;;  %1879 = vmatprep.subr.bf16.mxu0 %v5703_v44  ;;  %v5769_v27 = vld [vmem:[#allocation2 + $0x444] ss:$16 sps:$4 sm:$0xff]   ;;  %v5767_v29 = vld [vmem:[#allocation2 + $0x440] ss:$16 sps:$4 sm:$0xff]   ;;  %v5788_v44 = vld [vmem:[%s6718_s26 + $0x18] ss:$0 sps:$4 sm:$0xff]  }
  0x63   : > { %1920 = vmatprep.subr.bf16.mxu1 %v5705_v45  ;;  %v5772_v28 = vld [vmem:[#allocation2 + $0x644] ss:$16 sps:$4 sm:$0xff]   ;;  %v5770_v30 = vld [vmem:[#allocation2 + $0x640] ss:$16 sps:$4 sm:$0xff]   ;;  %v5789_v45 = vld [vmem:[#allocation2 + $0xe8] ss:$16 sps:$4 sm:$0xff]  }
  0x64   : > { %v5775_v31 = vld [vmem:[#allocation2 + $0x424] ss:$16 sps:$4 sm:$0xff]   ;;  %v5773_v34 = vld [vmem:[#allocation2 + $0x420] ss:$16 sps:$4 sm:$0xff]  }
  0x65   : > { %1880 = vmatpush2.bf16.msra.mxu0 %v5707_v49  ;;  %v5778_v32 = vld [vmem:[#allocation2 + $0x624] ss:$16 sps:$4 sm:$0xff]   ;;  %v5776_v36 = vld [vmem:[#allocation2 + $0x620] ss:$16 sps:$4 sm:$0xff]  }
  0x66   : > { %1921 = vmatpush2.bf16.msra.mxu1 %v5708_v50  ;;  %1881 = vmatprep.subr.bf16.mxu0 %v5709_v52  ;;  %v6736_v33 = vld [vmem:[%s6718_s26 + $0x10] sm:$0xff]  ;;  %v5795_v50 = vld [vmem:[#allocation2 + $0xc8] ss:$16 sps:$4 sm:$0xff]  }
  0x67   : > { %1922 = vmatprep.subr.bf16.mxu1 %v5711_v53  ;;  %v6740_v35 = vcombine.high %v6736_v33, %v6736_v33  ;;  %v5781_v37 = vld [vmem:[#allocation2 + $0x404] ss:$16 sps:$4 sm:$0xff]   ;;  %v5779_v39 = vld [vmem:[#allocation2 + $0x400] ss:$16 sps:$4 sm:$0xff]   ;;  %v5803_v53 = vld [vmem:[#allocation2 + $0xac] ss:$16 sps:$4 sm:$0xff]  }
  0x68   : > { %v5784_v38 = vld [vmem:[#allocation2 + $0x604] ss:$16 sps:$4 sm:$0xff]   ;;  %v5782_v40 = vld [vmem:[#allocation2 + $0x600] ss:$16 sps:$4 sm:$0xff]  }
  0x69   : > { %1882 = vmatpush2.bf16.msra.mxu0 %v5713_v54  ;;  %v5787_v41 = vld [vmem:[#allocation2 + $0x5e4] ss:$16 sps:$4 sm:$0xff]   ;;  %v5785_v43 = vld [vmem:[#allocation2 + $0x5e0] ss:$16 sps:$4 sm:$0xff]  }
  0x6a   : > { %1923 = vmatpush2.bf16.msra.mxu1 %v5714_v55  ;;  %1883 = vmatprep.subr.bf16.mxu0 %v5715_v56  ;;  %v5794_v46 = vld [vmem:[#allocation2 + $0x5c4] ss:$16 sps:$4 sm:$0xff]   ;;  %v5792_v49 = vld [vmem:[#allocation2 + $0x5c0] ss:$16 sps:$4 sm:$0xff]   ;;  %v5801_v55 = vld [vmem:[#allocation2 + $0xa8] ss:$16 sps:$4 sm:$0xff]  }
  0x6b   : > { %1924 = vmatprep.subr.bf16.mxu1 %v5717_v57  ;;  %v5800_v52 = vld [vmem:[#allocation2 + $0x5a4] ss:$16 sps:$4 sm:$0xff]   ;;  %v5798_v54 = vld [vmem:[#allocation2 + $0x5a0] ss:$16 sps:$4 sm:$0xff]   ;;  %v5809_v57 = vld [vmem:[#allocation2 + $0x8c] ss:$16 sps:$4 sm:$0xff]  }
  0x6c   : > { %v5806_v56 = vld [vmem:[#allocation2 + $0x584] ss:$16 sps:$4 sm:$0xff]  }
  0x6d   : > { %1884 = vmatpush2.bf16.msra.mxu0 %v5719_v58  ;;  %v5804_v58 = vld [vmem:[#allocation2 + $0x580] ss:$16 sps:$4 sm:$0xff]  }
  0x6e   : > { %1925 = vmatpush2.bf16.msra.mxu1 %v5720_v59  ;;  %1885 = vmatprep.subr.bf16.mxu0 %v5721_v60  ;;  %v5807_v59 = vld [vmem:[#allocation2 + $0x88] ss:$16 sps:$4 sm:$0xff]   ;;  %v5812_v60 = vld [vmem:[#allocation2 + $0x564] ss:$16 sps:$4 sm:$0xff]  }
  0x6f   : > { %1926 = vmatprep.subr.bf16.mxu1 %v5723_v61  ;;  %v5815_v61 = vld [vmem:[#allocation2 + $0x6c] ss:$16 sps:$4 sm:$0xff]  }
  0x71   : > { %1886 = vmatpush2.bf16.msra.mxu0 %v5725_v62  ;;  %v5810_v62 = vld [vmem:[#allocation2 + $0x560] ss:$16 sps:$4 sm:$0xff]  }
  0x72   : > { %1927 = vmatpush2.bf16.msra.mxu1 %v5726_v63  ;;  %1887 = vmatprep.subr.bf16.mxu0 %v5727_v0  ;;  %v5818_v63 = vld [vmem:[#allocation2 + $0x544] ss:$16 sps:$4 sm:$0xff]   ;;  %v5821_v0 = vld [vmem:[#allocation2 + $0x4c] ss:$16 sps:$4 sm:$0xff]  }
  0x73   : > { %1928 = vmatprep.subr.bf16.mxu1 %v5729_v1  ;;  %v5816_v1 = vld [vmem:[#allocation2 + $0x540] ss:$16 sps:$4 sm:$0xff]  }
  0x75   : > { %1888 = vmatpush2.bf16.msra.mxu0 %v5731_v2  ;;  %v5819_v2 = vld [vmem:[#allocation2 + $0x48] ss:$16 sps:$4 sm:$0xff]  }
  0x76   : > { %1929 = vmatpush2.bf16.msra.mxu1 %v5732_v3  ;;  %1939 = vmatprep.subr.bf16.mxu0 %v5739_v4  ;;  %v5824_v3 = vld [vmem:[#allocation2 + $0x524] ss:$16 sps:$4 sm:$0xff]   ;;  %v5827_v4 = vld [vmem:[#allocation2 + $0x2c] ss:$16 sps:$4 sm:$0xff]  }
  0x77   : > { %1980 = vmatprep.subr.bf16.mxu1 %v5742_v5  ;;  %v5822_v5 = vld [vmem:[#allocation2 + $0x520] ss:$16 sps:$4 sm:$0xff]  }
  0x78   : > { %1890 = vmatmul.mubr.bf16.vlgmr.msra.gmra.mxu0 %v6728_v6 }
  0x79   : > { %1931 = vmatmul.mubr.bf16.vlgmr.msra.gmra.mxu1 %v6730_v7  ;;  %1940 = vmatpush1.bf16.msra.mxu0 %v5737_v8  ;;  %v5825_v8 = vld [vmem:[#allocation2 + $0x28] ss:$16 sps:$4 sm:$0xff]  }
  0x7a   : > { %1981 = vmatpush1.bf16.msra.mxu1 %v5740_v9  ;;  %1941 = vmatprep.subr.bf16.mxu0 %v5745_v10  ;;  %v5830_v9 = vld [vmem:[#allocation2 + $0x504] ss:$16 sps:$4 sm:$0xff]   ;;  %v5833_v10 = vld [vmem:[#allocation2 + $0xc] ss:$16 sps:$4 sm:$0xff]  }
  0x7b   : > { %1982 = vmatprep.subr.bf16.mxu1 %v5748_v11  ;;  %2012 = vmatprep.mubr.bf16.mxu1 %v6578_v16  ;;  %v5828_v11 = vld [vmem:[#allocation2 + $0x500] ss:$16 sps:$4 sm:$0xff]  }
  0x7c   : > { %1971 = vmatprep.mubr.bf16.mxu0 %v6740_v35 }
  0x7d   : > { %1942 = vmatpush1.bf16.msra.mxu0 %v5743_v12  ;;  %v5831_v12 = vld [vmem:[#allocation2 + $0x8] ss:$16 sps:$4 sm:$0xff]  }
  0x7e   : > { %1983 = vmatpush1.bf16.msra.mxu1 %v5746_v13  ;;  %1943 = vmatprep.subr.bf16.mxu0 %v5751_v14  ;;  %v5838_v13 = vld [vmem:[#allocation2 + $0x1ec] ss:$16 sps:$4 sm:$0xff]  }
  0x7f   : > { %1984 = vmatprep.subr.bf16.mxu1 %v5754_v15  ;;  %v5841_v14 = vld [vmem:[#allocation2 + $0x2ec] ss:$16 sps:$4 sm:$0xff]   ;;  %v6747_v15 = vcombine.low %v6736_v33, %v6736_v33  ;;  %v5860_v33 = vld [vmem:[#allocation2 + $0x168] ss:$16 sps:$4 sm:$0xff]  }
  0x81   : > { %1944 = vmatpush1.bf16.msra.mxu0 %v5749_v17  ;;  %v5836_v17 = vld [vmem:[#allocation2 + $0x1e8] ss:$16 sps:$4 sm:$0xff]  }
  0x82   : > { %1985 = vmatpush1.bf16.msra.mxu1 %v5752_v18  ;;  %1945 = vmatprep.subr.bf16.mxu0 %v5757_v19  ;;  %v5839_v18 = vld [vmem:[#allocation2 + $0x2e8] ss:$16 sps:$4 sm:$0xff]   ;;  %v5844_v19 = vld [vmem:[#allocation2 + $0x1cc] ss:$16 sps:$4 sm:$0xff]  }
  0x83   : > { %1986 = vmatprep.subr.bf16.mxu1 %v5760_v20  ;;  %v5847_v20 = vld [vmem:[#allocation2 + $0x2cc] ss:$16 sps:$4 sm:$0xff]  }
  0x85   : > { %1946 = vmatpush1.bf16.msra.mxu0 %v5755_v21  ;;  %v5842_v21 = vld [vmem:[#allocation2 + $0x1c8] ss:$16 sps:$4 sm:$0xff]  }
  0x86   : > { %1987 = vmatpush1.bf16.msra.mxu1 %v5758_v22  ;;  %1947 = vmatprep.subr.bf16.mxu0 %v5763_v23  ;;  %v5845_v22 = vld [vmem:[#allocation2 + $0x2c8] ss:$16 sps:$4 sm:$0xff]   ;;  %v5850_v23 = vld [vmem:[#allocation2 + $0x1ac] ss:$16 sps:$4 sm:$0xff]  }
  0x87   : > { %1988 = vmatprep.subr.bf16.mxu1 %v5766_v24  ;;  %v5853_v24 = vld [vmem:[#allocation2 + $0x2ac] ss:$16 sps:$4 sm:$0xff]  }
  0x89   : > { %1948 = vmatpush1.bf16.msra.mxu0 %v5761_v25  ;;  %v5848_v25 = vld [vmem:[#allocation2 + $0x1a8] ss:$16 sps:$4 sm:$0xff]  }
  0x8a   : > { %1989 = vmatpush1.bf16.msra.mxu1 %v5764_v26  ;;  %1949 = vmatprep.subr.bf16.mxu0 %v5769_v27  ;;  %v5851_v26 = vld [vmem:[#allocation2 + $0x2a8] ss:$16 sps:$4 sm:$0xff]   ;;  %v5856_v27 = vld [vmem:[#allocation2 + $0x18c] ss:$16 sps:$4 sm:$0xff]  }
  0x8b   : > { %1990 = vmatprep.subr.bf16.mxu1 %v5772_v28  ;;  %v5859_v28 = vld [vmem:[#allocation2 + $0x28c] ss:$16 sps:$4 sm:$0xff]  }
  0x8d   : > { %1950 = vmatpush1.bf16.msra.mxu0 %v5767_v29  ;;  %v5854_v29 = vld [vmem:[#allocation2 + $0x188] ss:$16 sps:$4 sm:$0xff]  }
  0x8e   : > { %1991 = vmatpush1.bf16.msra.mxu1 %v5770_v30  ;;  %1951 = vmatprep.subr.bf16.mxu0 %v5775_v31  ;;  %v5857_v30 = vld [vmem:[#allocation2 + $0x288] ss:$16 sps:$4 sm:$0xff]   ;;  %v5862_v31 = vld [vmem:[#allocation2 + $0x16c] ss:$16 sps:$4 sm:$0xff]  }
  0x8f   : > { %1992 = vmatprep.subr.bf16.mxu1 %v5778_v32  ;;  %v5865_v32 = vld [vmem:[#allocation2 + $0x26c] ss:$16 sps:$4 sm:$0xff]  }
  0x91   : > { %1952 = vmatpush1.bf16.msra.mxu0 %v5773_v34  ;;  %v5868_v34 = vld [vmem:[#allocation2 + $0x14c] ss:$16 sps:$4 sm:$0xff]  }
  0x92   : > { %1993 = vmatpush1.bf16.msra.mxu1 %v5776_v36  ;;  %1953 = vmatprep.subr.bf16.mxu0 %v5781_v37  ;;  %v5871_v36 = vld [vmem:[#allocation2 + $0x24c] ss:$16 sps:$4 sm:$0xff]   ;;  %v5866_v37 = vld [vmem:[#allocation2 + $0x148] ss:$16 sps:$4 sm:$0xff]  }
  0x93   : > { %1994 = vmatprep.subr.bf16.mxu1 %v5784_v38  ;;  %v5869_v38 = vld [vmem:[#allocation2 + $0x248] ss:$16 sps:$4 sm:$0xff]  }
  0x95   : > { %1954 = vmatpush1.bf16.msra.mxu0 %v5779_v39  ;;  %v5874_v39 = vld [vmem:[#allocation2 + $0x12c] ss:$16 sps:$4 sm:$0xff]  }
  0x96   : > { %1995 = vmatpush1.bf16.msra.mxu1 %v5782_v40  ;;  %1955 = vmatprep.subr.bf16.mxu0 %v5787_v41  ;;  %v5877_v40 = vld [vmem:[#allocation2 + $0x22c] ss:$16 sps:$4 sm:$0xff]   ;;  %v5872_v41 = vld [vmem:[#allocation2 + $0x128] ss:$16 sps:$4 sm:$0xff]  }
  0x97   : > { %2021 = vmatprep.subr.bf16.mxu1 %v5791_v42  ;;  %v5875_v42 = vld [vmem:[#allocation2 + $0x228] ss:$16 sps:$4 sm:$0xff]  }
  0x99   : > { %2013 = vmatmul.mubr.bf16.vlgmr.msra.gmra.mxu1 %v5788_v44  ;;  %1956 = vmatpush2.bf16.msra.mxu0 %v5785_v43  ;;  %v5880_v43 = vld [vmem:[#allocation2 + $0x10c] ss:$16 sps:$4 sm:$0xff]  }
  0x9a   : > { %2022 = vmatpush1.bf16.msra.mxu1 %v5789_v45  ;;  %1957 = vmatprep.subr.bf16.mxu0 %v5794_v46  ;;  %v5883_v44 = vld [vmem:[#allocation2 + $0x20c] ss:$16 sps:$4 sm:$0xff]   ;;  %v5878_v45 = vld [vmem:[#allocation2 + $0x108] ss:$16 sps:$4 sm:$0xff]  }
  0x9b   : > { %2023 = vmatprep.subr.bf16.mxu1 %v5797_v48  ;;  %2053 = vmatprep.mubr.bf16.mxu1 %v6721_v47  ;;  %v5813_v47 = vld [vmem:[#allocation2 + $0x68] ss:$16 sps:$4 sm:$0xff]   ;;  %v5886_v48 = vld [vmem:[#allocation2 + $0x3ec] ss:$16 sps:$4 sm:$0xff]  }
  0x9c   : > { %v5881_v46 = vld [vmem:[#allocation2 + $0x208] ss:$16 sps:$4 sm:$0xff]  }
  0x9d   : > { %1958 = vmatpush2.bf16.msra.mxu0 %v5792_v49  ;;  %v5889_v49 = vld [vmem:[#allocation2 + $0x4ec] ss:$16 sps:$4 sm:$0xff]  }
  0x9e   : > { %2024 = vmatpush1.bf16.msra.mxu1 %v5795_v50  ;;  %1959 = vmatprep.subr.bf16.mxu0 %v5800_v52  ;;  %v5884_v50 = vld [vmem:[#allocation2 + $0x3e8] ss:$16 sps:$4 sm:$0xff]  }
  0x9f   : > { %2025 = vmatprep.subr.bf16.mxu1 %v5803_v53  ;;  %v5887_v52 = vld [vmem:[#allocation2 + $0x4e8] ss:$16 sps:$4 sm:$0xff]   ;;  %v5892_v53 = vld [vmem:[#allocation2 + $0x3cc] ss:$16 sps:$4 sm:$0xff]  }
  0xa1   : > { %1960 = vmatpush2.bf16.msra.mxu0 %v5798_v54  ;;  %v5895_v54 = vld [vmem:[#allocation2 + $0x4cc] ss:$16 sps:$4 sm:$0xff]  }
  0xa2   : > { %2026 = vmatpush1.bf16.msra.mxu1 %v5801_v55  ;;  %1961 = vmatprep.subr.bf16.mxu0 %v5806_v56  ;;  %v5890_v55 = vld [vmem:[#allocation2 + $0x3c8] ss:$16 sps:$4 sm:$0xff]  }
  0xa3   : > { %2027 = vmatprep.subr.bf16.mxu1 %v5809_v57  ;;  %v5893_v56 = vld [vmem:[#allocation2 + $0x4c8] ss:$16 sps:$4 sm:$0xff]   ;;  %v5898_v57 = vld [vmem:[#allocation2 + $0x3ac] ss:$16 sps:$4 sm:$0xff]  }
  0xa5   : > { %1962 = vmatpush2.bf16.msra.mxu0 %v5804_v58  ;;  %v5901_v58 = vld [vmem:[#allocation2 + $0x4ac] ss:$16 sps:$4 sm:$0xff]  }
  0xa6   : > { %2028 = vmatpush1.bf16.msra.mxu1 %v5807_v59  ;;  %1963 = vmatprep.subr.bf16.mxu0 %v5812_v60  ;;  %v5896_v59 = vld [vmem:[#allocation2 + $0x3a8] ss:$16 sps:$4 sm:$0xff]  }
  0xa7   : > { %2029 = vmatprep.subr.bf16.mxu1 %v5815_v61  ;;  %v5899_v60 = vld [vmem:[#allocation2 + $0x4a8] ss:$16 sps:$4 sm:$0xff]   ;;  %v5904_v61 = vld [vmem:[#allocation2 + $0x38c] ss:$16 sps:$4 sm:$0xff]  }
  0xa9   : > { %1964 = vmatpush2.bf16.msra.mxu0 %v5810_v62  ;;  %v5907_v62 = vld [vmem:[#allocation2 + $0x48c] ss:$16 sps:$4 sm:$0xff]  }
  0xaa   : > { %2030 = vmatpush1.bf16.msra.mxu1 %v5813_v47  ;;  %1965 = vmatprep.subr.bf16.mxu0 %v5818_v63  ;;  %v5902_v47 = vld [vmem:[#allocation2 + $0x388] ss:$16 sps:$4 sm:$0xff]   ;;  %v5910_v63 = vld [vmem:[#allocation2 + $0x36c] ss:$16 sps:$4 sm:$0xff]  }
  0xab   : > { %2031 = vmatprep.subr.bf16.mxu1 %v5821_v0  ;;  %v5913_v0 = vld [vmem:[#allocation2 + $0x46c] ss:$16 sps:$4 sm:$0xff]  }
  0xad   : > { %1966 = vmatpush2.bf16.msra.mxu0 %v5816_v1  ;;  %v5908_v1 = vld [vmem:[#allocation2 + $0x368] ss:$16 sps:$4 sm:$0xff]  }
  0xae   : > { %2032 = vmatpush1.bf16.msra.mxu1 %v5819_v2  ;;  %1967 = vmatprep.subr.bf16.mxu0 %v5824_v3  ;;  %v5911_v2 = vld [vmem:[#allocation2 + $0x468] ss:$16 sps:$4 sm:$0xff]   ;;  %v5916_v3 = vld [vmem:[#allocation2 + $0x34c] ss:$16 sps:$4 sm:$0xff]  }
  0xaf   : > { %2033 = vmatprep.subr.bf16.mxu1 %v5827_v4  ;;  %v5919_v4 = vld [vmem:[#allocation2 + $0x44c] ss:$16 sps:$4 sm:$0xff]  }
  0xb1   : > { %1968 = vmatpush2.bf16.msra.mxu0 %v5822_v5  ;;  %v5917_v5 = vld [vmem:[#allocation2 + $0x448] ss:$16 sps:$4 sm:$0xff]  }
  0xb2   : > { %2034 = vmatpush1.bf16.msra.mxu1 %v5825_v8  ;;  %1969 = vmatprep.subr.bf16.mxu0 %v5830_v9  ;;  %v5922_v8 = vld [vmem:[#allocation2 + $0x32c] ss:$16 sps:$4 sm:$0xff]  }
  0xb3   : > { %2035 = vmatprep.subr.bf16.mxu1 %v5833_v10  ;;  %v5925_v9 = vld [vmem:[#allocation2 + $0x42c] ss:$16 sps:$4 sm:$0xff]   ;;  %v5920_v10 = vld [vmem:[#allocation2 + $0x328] ss:$16 sps:$4 sm:$0xff]  }
  0xb5   : > { %1970 = vmatpush2.bf16.msra.mxu0 %v5828_v11  ;;  %v5923_v11 = vld [vmem:[#allocation2 + $0x428] ss:$16 sps:$4 sm:$0xff]  }
  0xb6   : > { %2036 = vmatpush1.bf16.msra.mxu1 %v5831_v12  ;;  %2062 = vmatprep.subr.bf16.mxu0 %v5841_v14  ;;  %v5928_v12 = vld [vmem:[#allocation2 + $0x30c] ss:$16 sps:$4 sm:$0xff]   ;;  %v5926_v14 = vld [vmem:[#allocation2 + $0x308] ss:$16 sps:$4 sm:$0xff]  }
  0xb7   : > { %2037 = vmatprep.subr.bf16.mxu1 %v5838_v13  ;;  %v5931_v13 = vld [vmem:[#allocation2 + $0x40c] ss:$16 sps:$4 sm:$0xff]  }
  0xb8   : > { %1972 = vmatmul.mubr.bf16.vlgmr.msra.gmra.mxu0 %v6747_v15 }
  0xb9   : > { %2063 = vmatpush1.bf16.msra.mxu0 %v5839_v18  ;;  %2094 = vmatprep.mubr.bf16.mxu0 %v6724_v51  ;;  %v5863_v51 = vld [vmem:[#allocation2 + $0x268] ss:$16 sps:$4 sm:$0xff]   ;;  %v5934_v18 = vld [vmem:[#allocation2 + $0x5ec] ss:$16 sps:$4 sm:$0xff]  }
  0xba   : > { %2038 = vmatpush2.bf16.msra.mxu1 %v5836_v17  ;;  %2064 = vmatprep.subr.bf16.mxu0 %v5847_v20  ;;  %v5929_v17 = vld [vmem:[#allocation2 + $0x408] ss:$16 sps:$4 sm:$0xff]  }
  0xbb   : > { %2039 = vmatprep.subr.bf16.mxu1 %v5844_v19  ;;  %v5937_v19 = vld [vmem:[#allocation2 + $0x6ec] ss:$16 sps:$4 sm:$0xff]   ;;  %v5932_v20 = vld [vmem:[#allocation2 + $0x5e8] ss:$16 sps:$4 sm:$0xff]  }
  0xbd   : > { %2065 = vmatpush1.bf16.msra.mxu0 %v5845_v22  ;;  %v5940_v22 = vld [vmem:[#allocation2 + $0x5cc] ss:$16 sps:$4 sm:$0xff]  }
  0xbe   : > { %2040 = vmatpush2.bf16.msra.mxu1 %v5842_v21  ;;  %2066 = vmatprep.subr.bf16.mxu0 %v5853_v24  ;;  %v5935_v21 = vld [vmem:[#allocation2 + $0x6e8] ss:$16 sps:$4 sm:$0xff]  }
  0xbf   : > { %2041 = vmatprep.subr.bf16.mxu1 %v5850_v23  ;;  %v5943_v23 = vld [vmem:[#allocation2 + $0x6cc] ss:$16 sps:$4 sm:$0xff]   ;;  %v5938_v24 = vld [vmem:[#allocation2 + $0x5c8] ss:$16 sps:$4 sm:$0xff]  }
  0xc1   : > { %2067 = vmatpush1.bf16.msra.mxu0 %v5851_v26  ;;  %v5946_v26 = vld [vmem:[#allocation2 + $0x5ac] ss:$16 sps:$4 sm:$0xff]  }
  0xc2   : > { %2042 = vmatpush2.bf16.msra.mxu1 %v5848_v25  ;;  %2068 = vmatprep.subr.bf16.mxu0 %v5859_v28  ;;  %v5941_v25 = vld [vmem:[#allocation2 + $0x6c8] ss:$16 sps:$4 sm:$0xff]  }
  0xc3   : > { %2043 = vmatprep.subr.bf16.mxu1 %v5856_v27  ;;  %v5949_v27 = vld [vmem:[#allocation2 + $0x6ac] ss:$16 sps:$4 sm:$0xff]   ;;  %v5944_v28 = vld [vmem:[#allocation2 + $0x5a8] ss:$16 sps:$4 sm:$0xff]  }
  0xc5   : > { %2069 = vmatpush1.bf16.msra.mxu0 %v5857_v30  ;;  %v5952_v30 = vld [vmem:[#allocation2 + $0x58c] ss:$16 sps:$4 sm:$0xff]  }
  0xc6   : > { %2044 = vmatpush2.bf16.msra.mxu1 %v5854_v29  ;;  %2070 = vmatprep.subr.bf16.mxu0 %v5865_v32  ;;  %v5947_v29 = vld [vmem:[#allocation2 + $0x6a8] ss:$16 sps:$4 sm:$0xff]  }
  0xc7   : > { %2045 = vmatprep.subr.bf16.mxu1 %v5862_v31  ;;  %v5955_v31 = vld [vmem:[#allocation2 + $0x68c] ss:$16 sps:$4 sm:$0xff]   ;;  %v5950_v32 = vld [vmem:[#allocation2 + $0x588] ss:$16 sps:$4 sm:$0xff]  }
  0xc9   : > { %2071 = vmatpush1.bf16.msra.mxu0 %v5863_v51  ;;  %v5958_v51 = vld [vmem:[#allocation2 + $0x56c] ss:$16 sps:$4 sm:$0xff]  }
  0xca   : > { %2046 = vmatpush2.bf16.msra.mxu1 %v5860_v33  ;;  %2072 = vmatprep.subr.bf16.mxu0 %v5871_v36  ;;  %v5953_v33 = vld [vmem:[#allocation2 + $0x688] ss:$16 sps:$4 sm:$0xff]  }
  0xcb   : > { %2047 = vmatprep.subr.bf16.mxu1 %v5868_v34  ;;  %v5956_v34 = vld [vmem:[#allocation2 + $0x568] ss:$16 sps:$4 sm:$0xff]  }
  0xcc   : > { %v5959_v36 = vld [vmem:[#allocation2 + $0x668] ss:$16 sps:$4 sm:$0xff]  }
  0xcd   : > { %2073 = vmatpush1.bf16.msra.mxu0 %v5869_v38  ;;  %v5967_v38 = vld [vmem:[#allocation2 + $0x64c] ss:$16 sps:$4 sm:$0xff]  }
  0xce   : > { %2048 = vmatpush2.bf16.msra.mxu1 %v5866_v37  ;;  %2074 = vmatprep.subr.bf16.mxu0 %v5877_v40  ;;  %v5964_v37 = vld [vmem:[#allocation2 + $0x54c] ss:$16 sps:$4 sm:$0xff]   ;;  %v5965_v40 = vld [vmem:[#allocation2 + $0x648] ss:$16 sps:$4 sm:$0xff]  }
  0xcf   : > { %2049 = vmatprep.subr.bf16.mxu1 %v5874_v39  ;;  %v5962_v39 = vld [vmem:[#allocation2 + $0x548] ss:$16 sps:$4 sm:$0xff]  }
  0xd1   : > { %2075 = vmatpush1.bf16.msra.mxu0 %v5875_v42  ;;  %v5973_v42 = vld [vmem:[#allocation2 + $0x62c] ss:$16 sps:$4 sm:$0xff]  }
  0xd2   : > { %2050 = vmatpush2.bf16.msra.mxu1 %v5872_v41  ;;  %2076 = vmatprep.subr.bf16.mxu0 %v5883_v44  ;;  %v5970_v41 = vld [vmem:[#allocation2 + $0x52c] ss:$16 sps:$4 sm:$0xff]   ;;  %v5971_v44 = vld [vmem:[#allocation2 + $0x628] ss:$16 sps:$4 sm:$0xff]  }
  0xd3   : > { %2051 = vmatprep.subr.bf16.mxu1 %v5880_v43  ;;  %v5968_v43 = vld [vmem:[#allocation2 + $0x528] ss:$16 sps:$4 sm:$0xff]  }
  0xd5   : > { %2077 = vmatpush1.bf16.msra.mxu0 %v5881_v46  ;;  %v5979_v46 = vld [vmem:[#allocation2 + $0x60c] ss:$16 sps:$4 sm:$0xff]  }
  0xd6   : > { %2052 = vmatpush2.bf16.msra.mxu1 %v5878_v45  ;;  %2078 = vmatprep.subr.bf16.mxu0 %v5886_v48  ;;  %v5976_v45 = vld [vmem:[#allocation2 + $0x50c] ss:$16 sps:$4 sm:$0xff]   ;;  %v5974_v48 = vld [vmem:[#allocation2 + $0x508] ss:$16 sps:$4 sm:$0xff]  }
  0xd7   : > { %2103 = vmatprep.subr.bf16.mxu1 %v5889_v49  ;;  %v5977_v49 = vld [vmem:[#allocation2 + $0x608] ss:$16 sps:$4 sm:$0xff]  }
  0xd9   : > { %2054 = vmatmul.mubr.bf16.vlgmr.msra.gmra.mxu1 %v6728_v6  ;;  %2079 = vmatpush2.bf16.msra.mxu0 %v5884_v50  ;;  %v5905_v6 = vld [vmem:[#allocation2 + $0x488] ss:$16 sps:$4 sm:$0xff]   ;;  %v5982_v50 = vld [vmem:[#allocation4 + $0x74] ss:$8 sps:$4 sm:$0xff]  }
  0xda   : > { %2104 = vmatpush1.bf16.msra.mxu1 %v5887_v52  ;;  %2080 = vmatprep.subr.bf16.mxu0 %v5892_v53  ;;  %v5980_v52 = vld [vmem:[#allocation4 + $0x70] ss:$8 sps:$4 sm:$0xff]   ;;  %v5985_v53 = vld [vmem:[#allocation4 + $0x64] ss:$8 sps:$4 sm:$0xff]  }
  0xdb   : > { %2105 = vmatprep.subr.bf16.mxu1 %v5895_v54  ;;  %2135 = vmatprep.mubr.bf16.mxu1 %v6740_v35  ;;  %v5914_v35 = vld [vmem:[#allocation2 + $0x348] ss:$16 sps:$4 sm:$0xff]  }
  0xdc   : > { %v5983_v54 = vld [vmem:[#allocation4 + $0x60] ss:$8 sps:$4 sm:$0xff]  }
  0xdd   : > { %2081 = vmatpush2.bf16.msra.mxu0 %v5890_v55  ;;  %v6474_v55 = vld [vmem:[%s6718_s26 + $0x18] ss:$0 sps:$4 sm:$0xff]  }
  0xde   : > { %2106 = vmatpush1.bf16.msra.mxu1 %v5893_v56  ;;  %2082 = vmatprep.subr.bf16.mxu0 %v5898_v57  ;;  %v5988_v56 = vld [vmem:[#allocation4 + $0x54] ss:$8 sps:$4 sm:$0xff]   ;;  %v5986_v57 = vld [vmem:[#allocation4 + $0x50] ss:$8 sps:$4 sm:$0xff]  }
  0xdf   : > { %2107 = vmatprep.subr.bf16.mxu1 %v5901_v58  ;;  %v5991_v58 = vld [vmem:[#allocation4 + $0x44] ss:$8 sps:$4 sm:$0xff]  }
  0xe1   : > { %2083 = vmatpush2.bf16.msra.mxu0 %v5896_v59  ;;  %v6028_v59 = vld [vmem:[#allocation4 + $0x170] ss:$8 sps:$4 sm:$0xff]  }
  0xe2   : > { %2108 = vmatpush1.bf16.msra.mxu1 %v5899_v60  ;;  %2084 = vmatprep.subr.bf16.mxu0 %v5904_v61  ;;  %v6030_v60 = vld [vmem:[#allocation4 + $0x174] ss:$8 sps:$4 sm:$0xff]   ;;  %v6033_v61 = vld [vmem:[#allocation4 + $0x164] ss:$8 sps:$4 sm:$0xff]  }
  0xe3   : > { %2109 = vmatprep.subr.bf16.mxu1 %v5907_v62  ;;  %v5989_v62 = vld [vmem:[#allocation4 + $0x40] ss:$8 sps:$4 sm:$0xff]  }
  0xe5   : > { %2085 = vmatpush2.bf16.msra.mxu0 %v5902_v47  ;;  %v5994_v47 = vld [vmem:[#allocation4 + $0x34] ss:$8 sps:$4 sm:$0xff]  }
  0xe6   : > { %2110 = vmatpush1.bf16.msra.mxu1 %v5905_v6  ;;  %2086 = vmatprep.subr.bf16.mxu0 %v5910_v63  ;;  %v6031_v6 = vld [vmem:[#allocation4 + $0x160] ss:$8 sps:$4 sm:$0xff]   ;;  %v6036_v63 = vld [vmem:[#allocation4 + $0x154] ss:$8 sps:$4 sm:$0xff]  }
  0xe7   : > { %2111 = vmatprep.subr.bf16.mxu1 %v5913_v0  ;;  %v6034_v0 = vld [vmem:[#allocation4 + $0x150] ss:$8 sps:$4 sm:$0xff]  }
  0xe9   : > { %2087 = vmatpush2.bf16.msra.mxu0 %v5908_v1  ;;  %v5997_v1 = vld [vmem:[#allocation4 + $0x24] ss:$8 sps:$4 sm:$0xff]  }
  0xea   : > { %2112 = vmatpush1.bf16.msra.mxu1 %v5911_v2  ;;  %2088 = vmatprep.subr.bf16.mxu0 %v5916_v3  ;;  %v6039_v2 = vld [vmem:[#allocation4 + $0x144] ss:$8 sps:$4 sm:$0xff]   ;;  %v5995_v3 = vld [vmem:[#allocation4 + $0x20] ss:$8 sps:$4 sm:$0xff]  }
  0xeb   : > { %2113 = vmatprep.subr.bf16.mxu1 %v5919_v4  ;;  %v6037_v4 = vld [vmem:[#allocation4 + $0x140] ss:$8 sps:$4 sm:$0xff]  }
  0xed   : > { %2089 = vmatpush2.bf16.msra.mxu0 %v5914_v35  ;;  %v6000_v35 = vld [vmem:[#allocation4 + $0x14] ss:$8 sps:$4 sm:$0xff]  }
  0xee   : > { %2114 = vmatpush1.bf16.msra.mxu1 %v5917_v5  ;;  %2090 = vmatprep.subr.bf16.mxu0 %v5922_v8  ;;  %v6042_v5 = vld [vmem:[#allocation4 + $0x134] ss:$8 sps:$4 sm:$0xff]   ;;  %v5998_v8 = vld [vmem:[#allocation4 + $0x10] ss:$8 sps:$4 sm:$0xff]  }
  0xef   : > { %2115 = vmatprep.subr.bf16.mxu1 %v5925_v9  ;;  %v6040_v9 = vld [vmem:[#allocation4 + $0x130] ss:$8 sps:$4 sm:$0xff]  }
  0xf1   : > { %2091 = vmatpush2.bf16.msra.mxu0 %v5920_v10  ;;  %v6003_v10 = vld [vmem:[#allocation4 + $0x4] ss:$8 sps:$4 sm:$0xff]  }
  0xf2   : > { %2116 = vmatpush1.bf16.msra.mxu1 %v5923_v11  ;;  %2092 = vmatprep.subr.bf16.mxu0 %v5928_v12  ;;  %v6001_v11 = vld [vmem:[#allocation4] ss:$8 sps:$4 sm:$0xff]   ;;  %v6006_v12 = vld [vmem:[#allocation4 + $0xf4] ss:$8 sps:$4 sm:$0xff]  }
  0xf3   : > { %2117 = vmatprep.subr.bf16.mxu1 %v5931_v13  ;;  %v6004_v13 = vld [vmem:[#allocation4 + $0xf0] ss:$8 sps:$4 sm:$0xff]  }
  0xf5   : > { %2093 = vmatpush2.bf16.msra.mxu0 %v5926_v14  ;;  %v6009_v14 = vld [vmem:[#allocation4 + $0xe4] ss:$8 sps:$4 sm:$0xff]  }
  0xf6   : > { %2118 = vmatpush1.bf16.msra.mxu1 %v5929_v17  ;;  %2144 = vmatprep.subr.bf16.mxu0 %v5937_v19  ;;  %v6045_v17 = vld [vmem:[#allocation4 + $0x124] ss:$8 sps:$4 sm:$0xff]   ;;  %v6043_v19 = vld [vmem:[#allocation4 + $0x120] ss:$8 sps:$4 sm:$0xff]  }
  0xf7   : > { %2119 = vmatprep.subr.bf16.mxu1 %v5934_v18  ;;  %v6007_v18 = vld [vmem:[#allocation4 + $0xe0] ss:$8 sps:$4 sm:$0xff]  }
  0xf8   : > { %2095 = vmatmul.mubr.bf16.vlgmr.msra.gmra.mxu0 %v6730_v7  ;;  %v5961_v7 = vld [vmem:[#allocation2 + $0x66c] ss:$16 sps:$4 sm:$0xff]  }
  0xf9   : > { %2145 = vmatpush1.bf16.msra.mxu0 %v5935_v21  ;;  %2176 = vmatprep.mubr.bf16.mxu0 %v6578_v16 }
  0xfa   : > { %2120 = vmatpush2.bf16.msra.mxu1 %v5932_v20  ;;  %2146 = vmatprep.subr.bf16.mxu0 %v5943_v23 }
  0xfb   : > { %2121 = vmatprep.subr.bf16.mxu1 %v5940_v22  ;;  %v6012_v22 = vld [vmem:[#allocation4 + $0xd4] ss:$8 sps:$4 sm:$0xff]  }
  0xfd   : > { %2147 = vmatpush1.bf16.msra.mxu0 %v5941_v25  ;;  %v6048_v25 = vld [vmem:[#allocation4 + $0x114] ss:$8 sps:$4 sm:$0xff]  }
  0xfe   : > { %2122 = vmatpush2.bf16.msra.mxu1 %v5938_v24  ;;  %2148 = vmatprep.subr.bf16.mxu0 %v5949_v27  ;;  %v6046_v27 = vld [vmem:[#allocation4 + $0x110] ss:$8 sps:$4 sm:$0xff]  }
  0xff   : > { %2123 = vmatprep.subr.bf16.mxu1 %v5946_v26  ;;  %v6010_v26 = vld [vmem:[#allocation4 + $0xd0] ss:$8 sps:$4 sm:$0xff]  }
 0x101   : > { %2149 = vmatpush1.bf16.msra.mxu0 %v5947_v29 }
 0x102   : > { %2124 = vmatpush2.bf16.msra.mxu1 %v5944_v28  ;;  %2150 = vmatprep.subr.bf16.mxu0 %v5955_v31 }
 0x103   : > { %2125 = vmatprep.subr.bf16.mxu1 %v5952_v30 }
 0x105   : > { %2151 = vmatpush1.bf16.msra.mxu0 %v5953_v33  ;;  %v6049_v33 = vld [vmem:[#allocation4 + $0x100] ss:$8 sps:$4 sm:$0xff]  }
 0x106   : > { %2126 = vmatpush2.bf16.msra.mxu1 %v5950_v32  ;;  %2152 = vmatprep.subr.bf16.mxu0 %v5961_v7  ;;  %v6015_v32 = vld [vmem:[#allocation4 + $0xc4] ss:$8 sps:$4 sm:$0xff]   ;;  %v6054_v7 = vld [vmem:[#allocation4 + $0x1f4] ss:$8 sps:$4 sm:$0xff]  }
 0x107   : > { %2127 = vmatprep.subr.bf16.mxu1 %v5958_v51  ;;  %v6051_v51 = vld [vmem:[#allocation4 + $0x104] ss:$8 sps:$4 sm:$0xff]  }
 0x109   : > { %2153 = vmatpush1.bf16.msra.mxu0 %v5959_v36  ;;  %v6018_v36 = vld [vmem:[#allocation4 + $0xb4] ss:$8 sps:$4 sm:$0xff]  }
 0x10a   : > { %2128 = vmatpush2.bf16.msra.mxu1 %v5956_v34  ;;  %2154 = vmatprep.subr.bf16.mxu0 %v5967_v38  ;;  %v6013_v34 = vld [vmem:[#allocation4 + $0xc0] ss:$8 sps:$4 sm:$0xff]   ;;  %v6057_v38 = vld [vmem:[#allocation4 + $0x1e4] ss:$8 sps:$4 sm:$0xff]  }
 0x10b   : > { %2129 = vmatprep.subr.bf16.mxu1 %v5964_v37  ;;  %v6052_v37 = vld [vmem:[#allocation4 + $0x1f0] ss:$8 sps:$4 sm:$0xff]  }
 0x10d   : > { %2155 = vmatpush1.bf16.msra.mxu0 %v5965_v40  ;;  %v6055_v40 = vld [vmem:[#allocation4 + $0x1e0] ss:$8 sps:$4 sm:$0xff]  }
 0x10e   : > { %2130 = vmatpush2.bf16.msra.mxu1 %v5962_v39  ;;  %2156 = vmatprep.subr.bf16.mxu0 %v5973_v42  ;;  %v6016_v39 = vld [vmem:[#allocation4 + $0xb0] ss:$8 sps:$4 sm:$0xff]   ;;  %v6060_v42 = vld [vmem:[#allocation4 + $0x1d4] ss:$8 sps:$4 sm:$0xff]  }
 0x10f   : > { %2131 = vmatprep.subr.bf16.mxu1 %v5970_v41  ;;  %v6021_v41 = vld [vmem:[#allocation4 + $0xa4] ss:$8 sps:$4 sm:$0xff]  }
 0x111   : > { %2157 = vmatpush1.bf16.msra.mxu0 %v5971_v44  ;;  %v6058_v44 = vld [vmem:[#allocation4 + $0x1d0] ss:$8 sps:$4 sm:$0xff]  }
 0x112   : > { %2132 = vmatpush2.bf16.msra.mxu1 %v5968_v43  ;;  %2158 = vmatprep.subr.bf16.mxu0 %v5979_v46  ;;  %v6019_v43 = vld [vmem:[#allocation4 + $0xa0] ss:$8 sps:$4 sm:$0xff]   ;;  %v6063_v46 = vld [vmem:[#allocation4 + $0x1c4] ss:$8 sps:$4 sm:$0xff]  }
 0x113   : > { %2133 = vmatprep.subr.bf16.mxu1 %v5976_v45  ;;  %v6024_v45 = vld [vmem:[#allocation4 + $0x94] ss:$8 sps:$4 sm:$0xff]  }
 0x115   : > { %2159 = vmatpush1.bf16.msra.mxu0 %v5977_v49  ;;  %v6061_v49 = vld [vmem:[#allocation4 + $0x1c0] ss:$8 sps:$4 sm:$0xff]  }
 0x116   : > { %2134 = vmatpush2.bf16.msra.mxu1 %v5974_v48  ;;  %2589 = vmatprep.subr.bf16.mxu0 %v5982_v50  ;;  %v6022_v48 = vld [vmem:[#allocation4 + $0x90] ss:$8 sps:$4 sm:$0xff]   ;;  %v6027_v50 = vld [vmem:[#allocation4 + $0x84] ss:$8 sps:$4 sm:$0xff]  }
 0x117   : > { %2630 = vmatprep.subr.bf16.mxu1 %v6030_v60  ;;  %v6070_v60 = vld [vmem:[#allocation4 + $0x190] ss:$8 sps:$4 sm:$0xff]  }
 0x118   : > { %2177 = vmatmul.mubr.bf16.vlgmr.msra.gmra.mxu0 %v6474_v55  ;;  %v6069_v55 = vld [vmem:[#allocation4 + $0x1a4] ss:$8 sps:$4 sm:$0xff]  }
 0x119   : > { %2136 = vmatmul.mubr.bf16.vlgmr.msra.gmra.mxu1 %v6747_v15  ;;  %2590 = vmatpush1.bf16.msra.mxu0 %v5980_v52  ;;  %v5992_v15 = vld [vmem:[#allocation4 + $0x30] ss:$8 sps:$4 sm:$0xff]   ;;  %v6066_v52 = vld [vmem:[#allocation4 + $0x1b4] ss:$8 sps:$4 sm:$0xff]  }
 0x11a   : > { %2591 = vmatprep.subr.bf16.mxu0 %v5985_v53  ;;  %2631 = vmatpush1.bf16.msra.mxu1 %v6028_v59  ;;  %v6025_v53 = vld [vmem:[#allocation4 + $0x80] ss:$8 sps:$4 sm:$0xff]   ;;  %v6072_v59 = vld [vmem:[#allocation4 + $0x194] ss:$8 sps:$4 sm:$0xff]  }
 0x11b   : > { %2632 = vmatprep.subr.bf16.mxu1 %v6033_v61 }
 0x11d   : > { %2592 = vmatpush1.bf16.msra.mxu0 %v5983_v54  ;;  %v6064_v54 = vld [vmem:[#allocation4 + $0x1b0] ss:$8 sps:$4 sm:$0xff]  }
 0x11e   : > { %2593 = vmatprep.subr.bf16.mxu0 %v5988_v56  ;;  %2633 = vmatpush1.bf16.msra.mxu1 %v6031_v6  ;;  %v6067_v56 = vld [vmem:[#allocation4 + $0x1a0] ss:$8 sps:$4 sm:$0xff]  }
 0x11f   : > { %2634 = vmatprep.subr.bf16.mxu1 %v6036_v63  ;;  %v6073_v6 = vld [vmem:[#allocation4 + $0x180] ss:$8 sps:$4 sm:$0xff]   ;;  %v692_v63 = vlaneseq }
 0x121   : > { %2594 = vmatpush1.bf16.msra.mxu0 %v5986_v57 }
 0x122   : > { %2595 = vmatprep.subr.bf16.mxu0 %v5991_v58  ;;  %2635 = vmatpush1.bf16.msra.mxu1 %v6034_v0 }
 0x123   : > { %2636 = vmatprep.subr.bf16.mxu1 %v6039_v2 }
 0x125   : > { %2596 = vmatpush1.bf16.msra.mxu0 %v5989_v62 }
 0x126   : > { %2597 = vmatprep.subr.bf16.mxu0 %v5994_v47  ;;  %2637 = vmatpush1.bf16.msra.mxu1 %v6037_v4  ;;  %v6075_v47 = vld [vmem:[#allocation4 + $0x184] ss:$8 sps:$4 sm:$0xff]  }
 0x127   : > { %2638 = vmatprep.subr.bf16.mxu1 %v6042_v5 }
 0x129   : > { %2598 = vmatpush1.bf16.msra.mxu0 %v5992_v15  ;;  %v6765_v15 = vshrl.u32 %v692_v63, 7  ;;  %v6093_v63 = vld [vmem:[%s6971_s6 + $0xac] ss:$16 sps:$4 sm:$0xff]  }
 0x12a   : > { %2599 = vmatprep.subr.bf16.mxu0 %v5997_v1  ;;  %2639 = vmatpush1.bf16.msra.mxu1 %v6040_v9  ;;  %v690_v1 = vld [vmem:[%s6968_s3] sm:$0xf] }
 0x12b   : > { %2640 = vmatprep.subr.bf16.mxu1 %v6045_v17  ;;  %v6768_v0 = vsub.s32 0, %v6765_v15  ;;  %v6774_v2 = vsub.s32 1, %v6765_v15 }
 0x12d   : > { %2600 = vmatpush1.bf16.msra.mxu0 %v5995_v3  ;;  %v695_v3 = vrot.slane %v690_v1, %v6768_v0  ;;  %v699_v4 = vrot.slane %v690_v1, %v6774_v2 }
 0x12e   : > { %2601 = vmatprep.subr.bf16.mxu0 %v6000_v35  ;;  %2641 = vmatpush1.bf16.msra.mxu1 %v6043_v19 }
 0x12f   : > { %2642 = vmatprep.subr.bf16.mxu1 %v6048_v25 }
 0x131   : > { %2602 = vmatpush1.bf16.msra.mxu0 %v5998_v8 }
 0x132   : > { %2603 = vmatprep.subr.bf16.mxu0 %v6003_v10  ;;  %2643 = vmatpush1.bf16.msra.mxu1 %v6046_v27 }
 0x133   : > { %2644 = vmatprep.subr.bf16.mxu1 %v6051_v51  ;;  %v6081_v51 = vld [vmem:[%s6971_s6 + $0xec] ss:$16 sps:$4 sm:$0xff]  }
 0x135   : > { %2604 = vmatpush1.bf16.msra.mxu0 %v6001_v11 }
 0x136   : > { %2605 = vmatprep.subr.bf16.mxu0 %v6006_v12  ;;  %2645 = vmatpush1.bf16.msra.mxu1 %v6049_v33  ;;  %v6078_v33 = vld [vmem:[%s6971_s6 + $0xe4] ss:$16 sps:$4 sm:$0xff]  }
 0x137   : > { %2646 = vmatprep.subr.bf16.mxu1 %v6054_v7  ;;  %v6793_v7 = vsub.s32 2, %v6765_v15 }
 0x138   : > { %v6757_v20 = vpop.f32.mrf.mxu0 }
 0x139   : > { %v6759_v21 = vpop.f32.mrf.mxu1  ;;  %2606 = vmatpush2.bf16.msra.mxu0 %v6004_v13  ;;  %v1892_v35 = vadd.f32 %v6757_v20, %v695_v3  ;;  %v6091_v3 = vld [vmem:[%s6971_s6 + $0xa8] ss:$16 sps:$4 sm:$0xff]  }
 0x13a   : > { %v6761_v23 = vpop.f32.mrf.mxu0  ;;  %2607 = vmatprep.subr.bf16.mxu0 %v6009_v14  ;;  %2647 = vmatpush2.bf16.msra.mxu1 %v6052_v37 }
 0x13b   : > { %v6763_v24 = vpop.f32.mrf.mxu1  ;;  %2648 = vmatprep.subr.bf16.mxu1 %v6057_v38  ;;  %v1894_v5 = vadd.f32 %v6761_v23, %v699_v4  ;;  %v1933_v8 = vadd.f32 %v6759_v21, %v1892_v35  ;;  %v6096_v4 = vld [vmem:[%s6971_s6 + $0x84] ss:$16 sps:$4 sm:$0xff]   ;;  %v6099_v35 = vld [vmem:[%s6971_s6 + $0x8c] ss:$16 sps:$4 sm:$0xff]  }
 0x13c   : > { %v1895_v28 = vpop.f32.mrf.mxu0 }
 0x13d   : > { %v1936_v29 = vpop.f32.mrf.mxu1  ;;  %2608 = vmatpush2.bf16.msra.mxu0 %v6007_v18  ;;  %v1935_v10 = vadd.f32 %v6763_v24, %v1894_v5  ;;  %v6094_v5 = vld [vmem:[%s6971_s6 + $0x80] ss:$16 sps:$4 sm:$0xff]  }
 0x13e   : > { %v1896_v30 = vpop.f32.mrf.mxu0  ;;  %2609 = vmatprep.subr.bf16.mxu0 %v6012_v22  ;;  %2649 = vmatpush2.bf16.msra.mxu1 %v6055_v40 }
 0x13f   : > { %v1937_v31 = vpop.f32.mrf.mxu1  ;;  %2650 = vmatprep.subr.bf16.mxu1 %v6060_v42 }
 0x141   : > { %2610 = vmatpush2.bf16.msra.mxu0 %v6010_v26 }
 0x142   : > { %2611 = vmatprep.subr.bf16.mxu0 %v6015_v32  ;;  %2651 = vmatpush2.bf16.msra.mxu1 %v6058_v44  ;;  %v6076_v32 = vld [vmem:[%s6971_s6 + $0xe0] ss:$16 sps:$4 sm:$0xff]  }
 0x143   : > { %2652 = vmatprep.subr.bf16.mxu1 %v6063_v46 }
 0x145   : > { %2612 = vmatpush2.bf16.msra.mxu0 %v6013_v34  ;;  %v6796_v34 = vsub.s32 3, %v6765_v15 }
 0x146   : > { %2613 = vmatprep.subr.bf16.mxu0 %v6018_v36  ;;  %2653 = vmatpush2.bf16.msra.mxu1 %v6061_v49  ;;  %v703_v36 = vrot.slane %v690_v1, %v6793_v7 }
 0x147   : > { %2654 = vmatprep.subr.bf16.mxu1 %v6066_v52  ;;  %v707_v37 = vrot.slane %v690_v1, %v6796_v34  ;;  %v6088_v1 = vld [vmem:[%s6971_s6 + $0xa0] ss:$16 sps:$4 sm:$0xff]  }
 0x149   : > { %2614 = vmatpush2.bf16.msra.mxu0 %v6016_v39 }
 0x14a   : > { %2615 = vmatprep.subr.bf16.mxu0 %v6021_v41  ;;  %2655 = vmatpush2.bf16.msra.mxu1 %v6064_v54 }
 0x14b   : > { %2656 = vmatprep.subr.bf16.mxu1 %v6069_v55 }
 0x14d   : > { %2616 = vmatpush2.bf16.msra.mxu0 %v6019_v43 }
 0x14e   : > { %2617 = vmatprep.subr.bf16.mxu0 %v6024_v45  ;;  %2657 = vmatpush2.bf16.msra.mxu1 %v6067_v56 }
 0x14f   : > { %2658 = vmatprep.subr.bf16.mxu1 %v6072_v59  ;;  %v6079_v59 = vld [vmem:[%s6971_s6 + $0xe8] ss:$16 sps:$4 sm:$0xff]  }
 0x151   : > { %2618 = vmatpush2.bf16.msra.mxu0 %v6022_v48 }
 0x152   : > { %2619 = vmatprep.subr.bf16.mxu0 %v6027_v50  ;;  %2659 = vmatpush2.bf16.msra.mxu1 %v6070_v60 }
 0x153   : > { %2660 = vmatprep.subr.bf16.mxu1 %v6075_v47  ;;  %v6082_v47 = vld [vmem:[%s6971_s6 + $0xc0] ss:$16 sps:$4 sm:$0xff]  }
 0x155   : > { %2620 = vmatpush2.bf16.msra.mxu0 %v6025_v53 }
 0x156   : > { %2661 = vmatpush2.bf16.msra.mxu1 %v6073_v6  ;;  %2892 = vmatprep.subr.bf16.mxu0 %v6078_v33  ;;  %v6085_v6 = vld [vmem:[%s6971_s6 + $0xc8] ss:$16 sps:$4 sm:$0xff]   ;;  %v2257_v33 = vld [vmem:[%s6970_s5] sm:$0x3] }
 0x157   : > { %2933 = vmatprep.subr.bf16.mxu1 %v6081_v51  ;;  %v2262_v51 = vrot.slane %v2257_v33, %v6768_v0 }
 0x159   : > { %v2014_v57 = vpop.f32.mrf.mxu1 }
 0x15b   : > { %v2016_v58 = vpop.f32.mrf.mxu1 }
 0x15d   : > { %v2018_v61 = vpop.f32.mrf.mxu1 }
 0x15e   : > { %v6084_v61 = vld [vmem:[%s6971_s6 + $0xc4] ss:$16 sps:$4 sm:$0xff]  }
 0x15f   : > { %v2019_v62 = vpop.f32.mrf.mxu1 }
 0x160   : > { %v6087_v62 = vld [vmem:[%s6971_s6 + $0xcc] ss:$16 sps:$4 sm:$0xff]  }
 0x178   : > { %v1973_v9 = vpop.f32.mrf.mxu0 }
 0x179   : > { %v1974_v11 = vadd.f32 %v1973_v9, %v1933_v8  ;;  %v6097_v8 = vld [vmem:[%s6971_s6 + $0x88] ss:$16 sps:$4 sm:$0xff]   ;;  %v6102_v9 = vld [vmem:[%s6971_s6 + $0x64] ss:$16 sps:$4 sm:$0xff]  }
 0x17a   : > { %v1975_v12 = vpop.f32.mrf.mxu0 }
 0x17b   : > { %v2015_v13 = vadd.f32 %v2014_v57, %v1974_v11  ;;  %v1976_v14 = vadd.f32 %v1975_v12, %v1935_v10  ;;  %v6100_v10 = vld [vmem:[%s6971_s6 + $0x60] ss:$16 sps:$4 sm:$0xff]   ;;  %v6103_v11 = vld [vmem:[%s6971_s6 + $0x68] ss:$16 sps:$4 sm:$0xff]   ;;  %v6105_v12 = vld [vmem:[%s6971_s6 + $0x6c] ss:$16 sps:$4 sm:$0xff]  }
 0x17c   : > { %v1977_v17 = vpop.f32.mrf.mxu0 }
 0x17d   : > { %v2017_v18 = vadd.f32 %v2016_v58, %v1976_v14  ;;  %v2185_v19 = vmax.f32 %v2015_v13, 0.0  ;;  %v6108_v13 = vld [vmem:[%s6971_s6 + $0x44] ss:$16 sps:$4 sm:$0xff]   ;;  %v6111_v14 = vld [vmem:[%s6971_s6 + $0x4c] ss:$16 sps:$4 sm:$0xff]  }
 0x17e   : > { %v1978_v22 = vpop.f32.mrf.mxu0  ;;  %v6106_v17 = vld [vmem:[%s6971_s6 + $0x40] ss:$16 sps:$4 sm:$0xff]  }
 0x17f   : > { %v2186_v25 = vmax.f32 %v2017_v18, 0.0  ;;  %v2189_v27 = vpack.c.bf16 %v2185_v19, %v2185_v19  ;;  %v6109_v18 = vld [vmem:[%s6971_s6 + $0x48] ss:$16 sps:$4 sm:$0xff]   ;;  %v6114_v19 = vld [vmem:[%s6971_s6 + $0x24] ss:$16 sps:$4 sm:$0xff]  }
 0x180   : > { %v6117_v22 = vld [vmem:[%s6971_s6 + $0x2c] ss:$16 sps:$4 sm:$0xff]  }
 0x181   : > { %v2190_v26 = vpack.c.bf16 %v2186_v25, %v2186_v25  ;;  %v6112_v25 = vld [vmem:[%s6971_s6 + $0x20] ss:$16 sps:$4 sm:$0xff]  }
 0x183   : > { %2621 = vmatprep.mubr.bf16.mxu0 %v2190_v26  ;;  %v6115_v26 = vld [vmem:[%s6971_s6 + $0x28] ss:$16 sps:$4 sm:$0xff]  }
 0x184   : > { %2622 = vmatmul.mubr.bf16.vlgmr.msra.gmra.mxu0 %v2189_v27  ;;  %v6120_v27 = vld [vmem:[%s6971_s6 + $0x4] ss:$16 sps:$4 sm:$0xff]  }
 0x185   : > { %2924 = vmatprep.mubr.bf16.mxu0 %v6578_v16  ;;  %2893 = vmatpush1.bf16.msra.mxu0 %v6076_v32 }
 0x186   : > { %2894 = vmatprep.subr.bf16.mxu0 %v6084_v61  ;;  %v6141_v61 = vld [vmem:[#allocation6 + $0x49c] ss:$28 sps:$4 sm:$0xff]  }
 0x189   : > { %2895 = vmatpush1.bf16.msra.mxu0 %v6082_v47  ;;  %v6139_v47 = vld [vmem:[#allocation6 + $0x498] ss:$28 sps:$4 sm:$0xff]  }
 0x199   : > { %v2055_v20 = vpop.f32.mrf.mxu1 }
 0x19a   : > { %v2056_v38 = vadd.f32 %v2055_v20, %v703_v36  ;;  %v6123_v20 = vld [vmem:[%s6971_s6 + $0xc] ss:$16 sps:$4 sm:$0xff]   ;;  %v2266_v36 = vrot.slane %v2257_v33, %v6774_v2  ;;  %v6187_v33 = vld [vmem:[#allocation6 + $0x658] ss:$28 sps:$4 sm:$0xff]  }
 0x19b   : > { %v2057_v21 = vpop.f32.mrf.mxu1 }
 0x19c   : > { %v2058_v39 = vadd.f32 %v2057_v21, %v707_v37  ;;  %v6118_v21 = vld [vmem:[%s6971_s6] ss:$16 sps:$4 sm:$0xff]  }
 0x19d   : > { %v2059_v23 = vpop.f32.mrf.mxu1 }
 0x19e   : > { %v6121_v23 = vld [vmem:[%s6971_s6 + $0x8] ss:$16 sps:$4 sm:$0xff]  }
 0x19f   : > { %v2060_v28 = vpop.f32.mrf.mxu1 }
 0x1a0   : > { %v6126_v28 = vld [vmem:[#allocation6 + $0x18c] ss:$28 sps:$4 sm:$0xff]  }
 0x1b8   : > { %v2096_v24 = vpop.f32.mrf.mxu0 }
 0x1b9   : > { %v2097_v40 = vadd.f32 %v2096_v24, %v2056_v38  ;;  %v6129_v24 = vld [vmem:[#allocation6 + $0x50c] ss:$28 sps:$4 sm:$0xff]  }
 0x1ba   : > { %v2098_v29 = vpop.f32.mrf.mxu0 }
 0x1bb   : > { %v2099_v43 = vadd.f32 %v2098_v29, %v2058_v39 }
 0x1bc   : > { %v2100_v30 = vpop.f32.mrf.mxu0 }
 0x1be   : > { %v2101_v31 = vpop.f32.mrf.mxu0 }
 0x1d8   : > { %v2178_v42 = vpop.f32.mrf.mxu0 }
 0x1d9   : > { %v2137_v41 = vpop.f32.mrf.mxu1 }
 0x1da   : > { %v2138_v44 = vadd.f32 %v2137_v41, %v2097_v40  ;;  %v2180_v46 = vpop.f32.mrf.mxu0 }
 0x1db   : > { %v2139_v45 = vpop.f32.mrf.mxu1 }
 0x1dc   : > { %v2179_v48 = vadd.f32 %v2178_v42, %v2138_v44  ;;  %v2140_v49 = vadd.f32 %v2139_v45, %v2099_v43  ;;  %v2182_v52 = vpop.f32.mrf.mxu0 }
 0x1dd   : > { %v2141_v50 = vpop.f32.mrf.mxu1 }
 0x1de   : > { %v2181_v53 = vadd.f32 %v2180_v46, %v2140_v49  ;;  %v2187_v54 = vmax.f32 %v2179_v48, 0.0  ;;  %v2183_v56 = vpop.f32.mrf.mxu0  ;;  %v2674_v48 = vld [vmem:[%s450_s27] sm:$0xff] }
 0x1df   : > { %v2142_v55 = vpop.f32.mrf.mxu1  ;;  %v6132_v56 = vld [vmem:[#allocation6 + $0x154] ss:$28 sps:$4 sm:$0xff]  }
 0x1e0   : > { %v2188_v57 = vmax.f32 %v2181_v53, 0.0  ;;  %v2191_v60 = vpack.c.bf16 %v2187_v54, %v2187_v54  ;;  %v6124_v53 = vld [vmem:[#allocation6 + $0x188] ss:$28 sps:$4 sm:$0xff]  }
 0x1e1   : > { %v6127_v54 = vld [vmem:[#allocation6 + $0x508] ss:$28 sps:$4 sm:$0xff]  }
 0x1e2   : > { %v2192_v58 = vpack.c.bf16 %v2188_v57, %v2188_v57  ;;  %v6135_v57 = vld [vmem:[#allocation6 + $0x4d4] ss:$28 sps:$4 sm:$0xff]  }
 0x1e4   : > { %2662 = vmatprep.mubr.bf16.mxu1 %v2192_v58  ;;  %v6130_v58 = vld [vmem:[#allocation6 + $0x150] ss:$28 sps:$4 sm:$0xff]  }
 0x1e5   : > { %2663 = vmatmul.mubr.bf16.vlgmr.msra.gmra.mxu1 %v2191_v60  ;;  %v6138_v60 = vld [vmem:[#allocation6 + $0x11c] ss:$28 sps:$4 sm:$0xff]  }
 0x1e6   : > { %2934 = vmatpush1.bf16.msra.mxu1 %v6079_v59  ;;  %2965 = vmatprep.mubr.bf16.mxu1 %v6578_v16  ;;  %v6090_v16 = vld [vmem:[%s6971_s6 + $0xa4] ss:$16 sps:$4 sm:$0xff]   ;;  %v6133_v59 = vld [vmem:[#allocation6 + $0x4d0] ss:$28 sps:$4 sm:$0xff]  }
 0x1e7   : > { %2935 = vmatprep.subr.bf16.mxu1 %v6087_v62  ;;  %2896 = vmatprep.subr.bf16.mxu0 %v6090_v16  ;;  %v6136_v62 = vld [vmem:[#allocation6 + $0x118] ss:$28 sps:$4 sm:$0xff]   ;;  %v6147_v16 = vld [vmem:[#allocation6 + $0x464] ss:$28 sps:$4 sm:$0xff]  }
 0x1e8   : > { %2897 = vmatpush1.bf16.msra.mxu0 %v6088_v1  ;;  %v6145_v1 = vld [vmem:[#allocation6 + $0x460] ss:$28 sps:$4 sm:$0xff]  }
 0x1e9   : > { %2898 = vmatprep.subr.bf16.mxu0 %v6096_v4  ;;  %v6153_v4 = vld [vmem:[#allocation6 + $0x42c] ss:$28 sps:$4 sm:$0xff]  }
 0x1ea   : > { %2936 = vmatpush1.bf16.msra.mxu1 %v6085_v6  ;;  %v6144_v6 = vld [vmem:[#allocation6 + $0xe4] ss:$28 sps:$4 sm:$0xff]  }
 0x1eb   : > { %2937 = vmatprep.subr.bf16.mxu1 %v6093_v63  ;;  %v6142_v63 = vld [vmem:[#allocation6 + $0xe0] ss:$28 sps:$4 sm:$0xff]  }
 0x1ec   : > { %2899 = vmatpush1.bf16.msra.mxu0 %v6094_v5  ;;  %v6151_v5 = vld [vmem:[#allocation6 + $0x428] ss:$28 sps:$4 sm:$0xff]  }
 0x1ed   : > { %2900 = vmatprep.subr.bf16.mxu0 %v6102_v9  ;;  %v6159_v9 = vld [vmem:[#allocation6 + $0x3f4] ss:$28 sps:$4 sm:$0xff]  }
 0x1ee   : > { %2938 = vmatpush1.bf16.msra.mxu1 %v6091_v3  ;;  %v6150_v3 = vld [vmem:[#allocation6 + $0xac] ss:$28 sps:$4 sm:$0xff]  }
 0x1ef   : > { %2939 = vmatprep.subr.bf16.mxu1 %v6099_v35  ;;  %v6148_v35 = vld [vmem:[#allocation6 + $0xa8] ss:$28 sps:$4 sm:$0xff]  }
 0x1f0   : > { %2901 = vmatpush1.bf16.msra.mxu0 %v6100_v10  ;;  %v6154_v10 = vld [vmem:[#allocation6 + $0x70] ss:$28 sps:$4 sm:$0xff]  }
 0x1f1   : > { %2902 = vmatprep.subr.bf16.mxu0 %v6108_v13  ;;  %v6165_v13 = vld [vmem:[#allocation6 + $0x3bc] ss:$28 sps:$4 sm:$0xff]  }
 0x1f2   : > { %2940 = vmatpush1.bf16.msra.mxu1 %v6097_v8  ;;  %v6156_v8 = vld [vmem:[#allocation6 + $0x74] ss:$28 sps:$4 sm:$0xff]  }
 0x1f3   : > { %2941 = vmatprep.subr.bf16.mxu1 %v6105_v12  ;;  %v6162_v12 = vld [vmem:[#allocation6 + $0x3c] ss:$28 sps:$4 sm:$0xff]  }
 0x1f4   : > { %2903 = vmatpush1.bf16.msra.mxu0 %v6106_v17  ;;  %v6163_v17 = vld [vmem:[#allocation6 + $0x3b8] ss:$28 sps:$4 sm:$0xff]  }
 0x1f5   : > { %2904 = vmatprep.subr.bf16.mxu0 %v6114_v19  ;;  %v6171_v19 = vld [vmem:[#allocation6 + $0x384] ss:$28 sps:$4 sm:$0xff]  }
 0x1f6   : > { %2942 = vmatpush1.bf16.msra.mxu1 %v6103_v11  ;;  %v6157_v11 = vld [vmem:[#allocation6 + $0x3f0] ss:$28 sps:$4 sm:$0xff]  }
 0x1f7   : > { %2943 = vmatprep.subr.bf16.mxu1 %v6111_v14  ;;  %v6160_v14 = vld [vmem:[#allocation6 + $0x38] ss:$28 sps:$4 sm:$0xff]  }
 0x1f8   : > { %2905 = vmatpush1.bf16.msra.mxu0 %v6112_v25  ;;  %v6169_v25 = vld [vmem:[#allocation6 + $0x380] ss:$28 sps:$4 sm:$0xff]  }
 0x1f9   : > { %2906 = vmatprep.subr.bf16.mxu0 %v6120_v27  ;;  %v6177_v27 = vld [vmem:[#allocation6 + $0x6cc] ss:$28 sps:$4 sm:$0xff]  }
 0x1fa   : > { %2944 = vmatpush1.bf16.msra.mxu1 %v6109_v18  ;;  %v6168_v18 = vld [vmem:[#allocation6 + $0x4] ss:$28 sps:$4 sm:$0xff]  }
 0x1fb   : > { %2945 = vmatprep.subr.bf16.mxu1 %v6117_v22  ;;  %v6166_v22 = vld [vmem:[#allocation6] ss:$28 sps:$4 sm:$0xff]  }
 0x1fc   : > { %2907 = vmatpush1.bf16.msra.mxu0 %v6118_v21  ;;  %v6175_v21 = vld [vmem:[#allocation6 + $0x6c8] ss:$28 sps:$4 sm:$0xff]  }
 0x1fd   : > { %4427 = vmatprep.subr.bf16.mxu0 %v6126_v28  ;;  %v6183_v28 = vld [vmem:[#allocation6 + $0x694] ss:$28 sps:$4 sm:$0xff]  }
 0x1fe   : > { %2946 = vmatpush1.bf16.msra.mxu1 %v6115_v26  ;;  %v6174_v26 = vld [vmem:[#allocation6 + $0x34c] ss:$28 sps:$4 sm:$0xff]  }
 0x1ff   : > { %2947 = vmatprep.subr.bf16.mxu1 %v6123_v20  ;;  %v6172_v20 = vld [vmem:[#allocation6 + $0x348] ss:$28 sps:$4 sm:$0xff]  }
 0x202   : > { %2948 = vmatpush1.bf16.msra.mxu1 %v6121_v23  ;;  %v6180_v23 = vld [vmem:[#allocation6 + $0x314] ss:$28 sps:$4 sm:$0xff]  }
 0x203   : > { %4468 = vmatprep.subr.bf16.mxu1 %v6129_v24  ;;  %v6178_v24 = vld [vmem:[#allocation6 + $0x310] ss:$28 sps:$4 sm:$0xff]  }
 0x244   : > { %v2623_v29 = vpop.f32.mrf.mxu0 }
 0x245   : > { %v2624_v37 = vadd.f32 %v2623_v29, %v2262_v51  ;;  %v6181_v29 = vld [vmem:[#allocation6 + $0x690] ss:$28 sps:$4 sm:$0xff]   ;;  %v6192_v51 = vld [vmem:[#allocation6 + $0x2a4] ss:$28 sps:$4 sm:$0xff]  }
 0x246   : > { %v2625_v30 = vpop.f32.mrf.mxu0 }
 0x247   : > { %v2626_v39 = vadd.f32 %v2625_v30, %v2266_v36  ;;  %v6186_v30 = vld [vmem:[#allocation6 + $0x2dc] ss:$28 sps:$4 sm:$0xff]   ;;  %v6195_v36 = vld [vmem:[#allocation6 + $0x624] ss:$28 sps:$4 sm:$0xff]  }
 0x248   : > { %v2627_v31 = vpop.f32.mrf.mxu0 }
 0x249   : > { %v6189_v31 = vld [vmem:[#allocation6 + $0x65c] ss:$28 sps:$4 sm:$0xff]  }
 0x24a   : > { %v2628_v32 = vpop.f32.mrf.mxu0 }
 0x24b   : > { %v6184_v32 = vld [vmem:[#allocation6 + $0x2d8] ss:$28 sps:$4 sm:$0xff]  }
 0x2a5   : > { %v2664_v38 = vpop.f32.mrf.mxu1 }
 0x2a6   : > { %v2665_v40 = vadd.f32 %v2664_v38, %v2624_v37  ;;  %v6190_v37 = vld [vmem:[#allocation6 + $0x2a0] ss:$28 sps:$4 sm:$0xff]  }
 0x2a7   : > { %v2666_v41 = vpop.f32.mrf.mxu1  ;;  %v6193_v38 = vld [vmem:[#allocation6 + $0x620] ss:$28 sps:$4 sm:$0xff]  }
 0x2a8   : > { %4828 = vst [vmem:[%s460_s18] sm:$0xff] %v2665_v40  ;;  %v2667_v42 = vadd.f32 %v2666_v41, %v2626_v39  ;;  %v6198_v39 = vld [vmem:[#allocation6 + $0x26c] ss:$28 sps:$4 sm:$0xff]  }
 0x2a9   : > { %v2668_v43 = vpop.f32.mrf.mxu1  ;;  %v6196_v41 = vld [vmem:[#allocation6 + $0x268] ss:$28 sps:$4 sm:$0xff]  }
 0x2aa   : > { %v2671_v44 = vmul.f32 0.5, %v2667_v42  ;;  %4829 = vst [vmem:[%s460_s18 + $0x8] sm:$0xff] %v2667_v42  ;;  %v6199_v42 = vld [vmem:[#allocation6 + $0x5e8] ss:$28 sps:$4 sm:$0xff]   ;;  %v6204_v43 = vld [vmem:[#allocation6 + $0x234] ss:$28 sps:$4 sm:$0xff]  }
 0x2ab   : > { %v2669_v45 = vpop.f32.mrf.mxu1 }
 0x2ac   : > { %v2672_v46 = vmul.f32 1.442695, %v2671_v44  ;;  %v6207_v44 = vld [vmem:[#allocation6 + $0x5b4] ss:$28 sps:$4 sm:$0xff]  }
 0x2ad   : > { %v6202_v45 = vld [vmem:[#allocation6 + $0x230] ss:$28 sps:$4 sm:$0xff]  }
 0x2ae   : > { %6444 = vpow2.f32 %v2672_v46  ;;  %v6205_v46 = vld [vmem:[#allocation6 + $0x5b0] ss:$28 sps:$4 sm:$0xff]  }
 0x2bb   : > { %v6445_v49 = vpop.eup %6444 }
 0x2bc   : > { %v2675_v50 = vmul.f32 %v6445_v49, %v2674_v48  ;;  %v6210_v48 = vld [vmem:[#allocation6 + $0x1fc] ss:$28 sps:$4 sm:$0xff]  }
 0x2bd   : > { %v6213_v49 = vld [vmem:[#allocation6 + $0x57c] ss:$28 sps:$4 sm:$0xff]  }
 0x2be   : > { %v2676_v52 = vadd.f32 %v2675_v50, %v2665_v40  ;;  %v6201_v40 = vld [vmem:[#allocation6 + $0x5ec] ss:$28 sps:$4 sm:$0xff]   ;;  %v6208_v50 = vld [vmem:[#allocation6 + $0x1f8] ss:$28 sps:$4 sm:$0xff]  }
 0x2c0   : > { %v2677_v55 = vpack.c.bf16 %v2676_v52, %v2676_v52  ;;  %v6211_v52 = vld [vmem:[#allocation6 + $0x578] ss:$28 sps:$4 sm:$0xff]  }
 0x2c2   : > { %2925 = vmatmul.mubr.bf16.vlgmr.msra.gmra.mxu0 %v2677_v55  ;;  %2966 = vmatmul.mubr.bf16.vlgmr.msra.gmra.mxu1 %v2677_v55  ;;  %v6214_v55 = vld [vmem:[#allocation6 + $0x1c0] ss:$28 sps:$4 sm:$0xff]  }
 0x2c3   : > { %4428 = vmatpush1.bf16.msra.mxu0 %v6124_v53  ;;  %4469 = vmatpush1.bf16.msra.mxu1 %v6127_v54  ;;  %v6216_v53 = vld [vmem:[#allocation6 + $0x1c4] ss:$28 sps:$4 sm:$0xff]  }
 0x2c4   : > { %4429 = vmatprep.subr.bf16.mxu0 %v6132_v56  ;;  %4470 = vmatprep.subr.bf16.mxu1 %v6135_v57  ;;  %v6219_v54 = vld [vmem:[#allocation6 + $0x544] ss:$28 sps:$4 sm:$0xff]   ;;  %v6222_v57 = vld [vmem:[#allocation6 + $0x194] ss:$28 sps:$4 sm:$0xff]  }
 0x2c5   : > { %v6217_v56 = vld [vmem:[#allocation6 + $0x540] ss:$28 sps:$4 sm:$0xff]  }
 0x2c7   : > { %4430 = vmatpush1.bf16.msra.mxu0 %v6130_v58  ;;  %4471 = vmatpush1.bf16.msra.mxu1 %v6133_v59  ;;  %v6225_v58 = vld [vmem:[#allocation6 + $0x514] ss:$28 sps:$4 sm:$0xff]   ;;  %v2710_v59 = vld [vmem:[%s6972_s7] sm:$0xf] }
 0x2c8   : > { %4431 = vmatprep.subr.bf16.mxu0 %v6138_v60  ;;  %4472 = vmatprep.subr.bf16.mxu1 %v6141_v61  ;;  %v2715_v60 = vrot.slane %v2710_v59, %v6768_v0  ;;  %v2723_v61 = vrot.slane %v2710_v59, %v6793_v7 }
 0x2cb   : > { %4432 = vmatpush1.bf16.msra.mxu0 %v6136_v62  ;;  %4473 = vmatpush1.bf16.msra.mxu1 %v6139_v47  ;;  %v2719_v62 = vrot.slane %v2710_v59, %v6774_v2  ;;  %v2727_v47 = vrot.slane %v2710_v59, %v6796_v34  ;;  %v6276_v59 = vld [vmem:[#allocation6 + $0x31c] ss:$28 sps:$4 sm:$0xff]  }
 0x2cc   : > { %4433 = vmatprep.subr.bf16.mxu0 %v6144_v6  ;;  %4474 = vmatprep.subr.bf16.mxu1 %v6147_v16 }
 0x2cf   : > { %4434 = vmatpush1.bf16.msra.mxu0 %v6142_v63  ;;  %4475 = vmatpush1.bf16.msra.mxu1 %v6145_v1 }
 0x2d0   : > { %4435 = vmatprep.subr.bf16.mxu0 %v6150_v3  ;;  %4476 = vmatprep.subr.bf16.mxu1 %v6153_v4 }
 0x2d3   : > { %4436 = vmatpush1.bf16.msra.mxu0 %v6148_v35  ;;  %4477 = vmatpush1.bf16.msra.mxu1 %v6151_v5 }
 0x2d4   : > { %4437 = vmatprep.subr.bf16.mxu0 %v6156_v8  ;;  %4478 = vmatprep.subr.bf16.mxu1 %v6159_v9 }
 0x2d7   : > { %4438 = vmatpush1.bf16.msra.mxu0 %v6154_v10  ;;  %4479 = vmatpush1.bf16.msra.mxu1 %v6157_v11 }
 0x2d8   : > { %4439 = vmatprep.subr.bf16.mxu0 %v6162_v12  ;;  %4480 = vmatprep.subr.bf16.mxu1 %v6165_v13 }
 0x2db   : > { %4440 = vmatpush1.bf16.msra.mxu0 %v6160_v14  ;;  %4481 = vmatpush1.bf16.msra.mxu1 %v6163_v17 }
 0x2dc   : > { %4441 = vmatprep.subr.bf16.mxu0 %v6168_v18  ;;  %4482 = vmatprep.subr.bf16.mxu1 %v6171_v19 }
 0x2df   : > { %4442 = vmatpush1.bf16.msra.mxu0 %v6166_v22  ;;  %4483 = vmatpush1.bf16.msra.mxu1 %v6169_v25  ;;  %v6220_v22 = vld [vmem:[#allocation6 + $0x190] ss:$28 sps:$4 sm:$0xff]  }
 0x2e0   : > { %4443 = vmatprep.subr.bf16.mxu0 %v6174_v26  ;;  %4484 = vmatprep.subr.bf16.mxu1 %v6177_v27  ;;  %v6223_v25 = vld [vmem:[#allocation6 + $0x510] ss:$28 sps:$4 sm:$0xff]  }
 0x2e3   : > { %4444 = vmatpush2.bf16.msra.mxu0 %v6172_v20  ;;  %4485 = vmatpush2.bf16.msra.mxu1 %v6175_v21  ;;  %v6228_v20 = vld [vmem:[#allocation6 + $0x15c] ss:$28 sps:$4 sm:$0xff]  }
 0x2e4   : > { %4445 = vmatprep.subr.bf16.mxu0 %v6180_v23  ;;  %4486 = vmatprep.subr.bf16.mxu1 %v6183_v28  ;;  %v6231_v21 = vld [vmem:[#allocation6 + $0x4dc] ss:$28 sps:$4 sm:$0xff]  }
 0x2e5   : > { %v6226_v23 = vld [vmem:[#allocation6 + $0x158] ss:$28 sps:$4 sm:$0xff]  }
 0x2e6   : > { %v6229_v28 = vld [vmem:[#allocation6 + $0x4d8] ss:$28 sps:$4 sm:$0xff]  }
 0x2e7   : > { %4446 = vmatpush2.bf16.msra.mxu0 %v6178_v24  ;;  %4487 = vmatpush2.bf16.msra.mxu1 %v6181_v29  ;;  %v6234_v24 = vld [vmem:[#allocation6 + $0x124] ss:$28 sps:$4 sm:$0xff]  }
 0x2e8   : > { %4447 = vmatprep.subr.bf16.mxu0 %v6186_v30  ;;  %4488 = vmatprep.subr.bf16.mxu1 %v6189_v31  ;;  %v6237_v29 = vld [vmem:[#allocation6 + $0x4a4] ss:$28 sps:$4 sm:$0xff]  }
 0x2e9   : > { %v6232_v30 = vld [vmem:[#allocation6 + $0x120] ss:$28 sps:$4 sm:$0xff]  }
 0x2ea   : > { %v6235_v31 = vld [vmem:[#allocation6 + $0x4a0] ss:$28 sps:$4 sm:$0xff]  }
 0x2eb   : > { %4448 = vmatpush2.bf16.msra.mxu0 %v6184_v32  ;;  %4489 = vmatpush2.bf16.msra.mxu1 %v6187_v33  ;;  %v6240_v32 = vld [vmem:[#allocation6 + $0xec] ss:$28 sps:$4 sm:$0xff]  }
 0x2ec   : > { %4449 = vmatprep.subr.bf16.mxu0 %v6192_v51  ;;  %4490 = vmatprep.subr.bf16.mxu1 %v6195_v36  ;;  %v6243_v33 = vld [vmem:[#allocation6 + $0x46c] ss:$28 sps:$4 sm:$0xff]  }
 0x2ed   : > { %v6238_v51 = vld [vmem:[#allocation6 + $0xe8] ss:$28 sps:$4 sm:$0xff]  }
 0x2ee   : > { %v6241_v36 = vld [vmem:[#allocation6 + $0x468] ss:$28 sps:$4 sm:$0xff]  }
 0x2ef   : > { %4450 = vmatpush2.bf16.msra.mxu0 %v6190_v37  ;;  %4491 = vmatpush2.bf16.msra.mxu1 %v6193_v38  ;;  %v6246_v37 = vld [vmem:[#allocation6 + $0xb4] ss:$28 sps:$4 sm:$0xff]  }
 0x2f0   : > { %4451 = vmatprep.subr.bf16.mxu0 %v6198_v39  ;;  %4492 = vmatprep.subr.bf16.mxu1 %v6201_v40  ;;  %v6249_v38 = vld [vmem:[#allocation6 + $0x434] ss:$28 sps:$4 sm:$0xff]  }
 0x2f1   : > { %v6244_v39 = vld [vmem:[#allocation6 + $0xb0] ss:$28 sps:$4 sm:$0xff]  }
 0x2f2   : > { %v6247_v40 = vld [vmem:[#allocation6 + $0x430] ss:$28 sps:$4 sm:$0xff]  }
 0x2f3   : > { %4452 = vmatpush2.bf16.msra.mxu0 %v6196_v41  ;;  %4493 = vmatpush2.bf16.msra.mxu1 %v6199_v42  ;;  %v6252_v41 = vld [vmem:[#allocation6 + $0x7c] ss:$28 sps:$4 sm:$0xff]  }
 0x2f4   : > { %4453 = vmatprep.subr.bf16.mxu0 %v6204_v43  ;;  %4494 = vmatprep.subr.bf16.mxu1 %v6207_v44  ;;  %v6255_v42 = vld [vmem:[#allocation6 + $0x3fc] ss:$28 sps:$4 sm:$0xff]  }
 0x2f5   : > { %v6250_v43 = vld [vmem:[#allocation6 + $0x78] ss:$28 sps:$4 sm:$0xff]  }
 0x2f6   : > { %v6253_v44 = vld [vmem:[#allocation6 + $0x3f8] ss:$28 sps:$4 sm:$0xff]  }
 0x2f7   : > { %4454 = vmatpush2.bf16.msra.mxu0 %v6202_v45  ;;  %4495 = vmatpush2.bf16.msra.mxu1 %v6205_v46  ;;  %v6258_v45 = vld [vmem:[#allocation6 + $0x44] ss:$28 sps:$4 sm:$0xff]  }
 0x2f8   : > { %4455 = vmatprep.subr.bf16.mxu0 %v6210_v48  ;;  %4496 = vmatprep.subr.bf16.mxu1 %v6213_v49  ;;  %v6261_v46 = vld [vmem:[#allocation6 + $0x3c4] ss:$28 sps:$4 sm:$0xff]  }
 0x2f9   : > { %v6256_v48 = vld [vmem:[#allocation6 + $0x40] ss:$28 sps:$4 sm:$0xff]  }
 0x2fa   : > { %v6259_v49 = vld [vmem:[#allocation6 + $0x3c0] ss:$28 sps:$4 sm:$0xff]  }
 0x2fb   : > { %4456 = vmatpush2.bf16.msra.mxu0 %v6208_v50  ;;  %4497 = vmatpush2.bf16.msra.mxu1 %v6211_v52  ;;  %v6264_v50 = vld [vmem:[#allocation6 + $0xc] ss:$28 sps:$4 sm:$0xff]  }
 0x2fc   : > { %4457 = vmatprep.subr.bf16.mxu0 %v6216_v53  ;;  %4498 = vmatprep.subr.bf16.mxu1 %v6219_v54  ;;  %v6267_v52 = vld [vmem:[#allocation6 + $0x38c] ss:$28 sps:$4 sm:$0xff]  }
 0x2fd   : > { %v6262_v53 = vld [vmem:[#allocation6 + $0x8] ss:$28 sps:$4 sm:$0xff]  }
 0x2fe   : > { %v6265_v54 = vld [vmem:[#allocation6 + $0x388] ss:$28 sps:$4 sm:$0xff]  }
 0x2ff   : > { %4458 = vmatpush2.bf16.msra.mxu0 %v6214_v55  ;;  %4499 = vmatpush2.bf16.msra.mxu1 %v6217_v56  ;;  %v6270_v55 = vld [vmem:[#allocation6 + $0x354] ss:$28 sps:$4 sm:$0xff]  }
 0x300   : > { %4509 = vmatprep.subr.bf16.mxu0 %v6222_v57  ;;  %4550 = vmatprep.subr.bf16.mxu1 %v6225_v58  ;;  %v6273_v56 = vld [vmem:[#allocation6 + $0x6d4] ss:$28 sps:$4 sm:$0xff]  }
 0x301   : > { %v6268_v57 = vld [vmem:[#allocation6 + $0x350] ss:$28 sps:$4 sm:$0xff]  }
 0x302   : > { %v6271_v58 = vld [vmem:[#allocation6 + $0x6d0] ss:$28 sps:$4 sm:$0xff]  }
 0x382   : > { %v2926_v6 = vpop.f32.mrf.mxu0  ;;  %v2967_v16 = vpop.f32.mrf.mxu1 }
 0x383   : > { %v2927_v63 = vadd.f32 %v2926_v6, %v2715_v60  ;;  %v2968_v1 = vadd.f32 %v2967_v16, %v2723_v61  ;;  %v6279_v60 = vld [vmem:[#allocation6 + $0x69c] ss:$28 sps:$4 sm:$0xff]   ;;  %v6285_v6 = vld [vmem:[#allocation6 + $0x664] ss:$28 sps:$4 sm:$0xff]  }
 0x384   : > { %v2928_v3 = vpop.f32.mrf.mxu0  ;;  %v2969_v4 = vpop.f32.mrf.mxu1  ;;  %v6274_v61 = vld [vmem:[#allocation6 + $0x318] ss:$28 sps:$4 sm:$0xff]   ;;  %v6280_v16 = vld [vmem:[#allocation6 + $0x2e0] ss:$28 sps:$4 sm:$0xff]  }
 0x385   : > { %v2929_v35 = vadd.f32 %v2928_v3, %v2719_v62  ;;  %v2970_v5 = vadd.f32 %v2969_v4, %v2727_v47  ;;  %v2974_v8 = vmax.f32 %v2927_v63, 0.0  ;;  %v2976_v9 = vmax.f32 %v2968_v1, 0.0  ;;  %v6277_v62 = vld [vmem:[#allocation6 + $0x698] ss:$28 sps:$4 sm:$0xff]   ;;  %v6282_v47 = vld [vmem:[#allocation6 + $0x2e4] ss:$28 sps:$4 sm:$0xff]  }
 0x386   : > { %v2930_v10 = vpop.f32.mrf.mxu0  ;;  %v2971_v11 = vpop.f32.mrf.mxu1  ;;  %v6283_v63 = vld [vmem:[#allocation6 + $0x660] ss:$28 sps:$4 sm:$0xff]   ;;  %v6288_v1 = vld [vmem:[#allocation6 + $0x2ac] ss:$28 sps:$4 sm:$0xff]  }
 0x387   : > { %v2975_v12 = vmax.f32 %v2929_v35, 0.0  ;;  %v2977_v13 = vmax.f32 %v2970_v5, 0.0  ;;  %v6912_v26 = vpack.c.bf16 %v2974_v8, %v2974_v8  ;;  %v6914_v27 = vpack.c.bf16 %v2976_v9, %v2976_v9  ;;  %v6291_v3 = vld [vmem:[#allocation6 + $0x62c] ss:$28 sps:$4 sm:$0xff]   ;;  %v6294_v5 = vld [vmem:[#allocation6 + $0x274] ss:$28 sps:$4 sm:$0xff]  }
 0x388   : > { %v2931_v14 = vpop.f32.mrf.mxu0  ;;  %v2972_v17 = vpop.f32.mrf.mxu1  ;;  %v6286_v4 = vld [vmem:[#allocation6 + $0x2a8] ss:$28 sps:$4 sm:$0xff]   ;;  %v6297_v8 = vld [vmem:[#allocation6 + $0x5f4] ss:$28 sps:$4 sm:$0xff]   ;;  %v6300_v11 = vld [vmem:[#allocation6 + $0x23c] ss:$28 sps:$4 sm:$0xff]  }
 0x389   : > { %v6908_v18 = vpack.c.bf16 %v2975_v12, %v2975_v12  ;;  %v6910_v19 = vpack.c.bf16 %v2977_v13, %v2977_v13  ;;  %v6289_v35 = vld [vmem:[#allocation6 + $0x628] ss:$28 sps:$4 sm:$0xff]   ;;  %v6292_v9 = vld [vmem:[#allocation6 + $0x270] ss:$28 sps:$4 sm:$0xff]   ;;  %v6303_v12 = vld [vmem:[#allocation6 + $0x5bc] ss:$28 sps:$4 sm:$0xff]  }
 0x38a   : > { %v6295_v10 = vld [vmem:[#allocation6 + $0x5f0] ss:$28 sps:$4 sm:$0xff]   ;;  %v6298_v13 = vld [vmem:[#allocation6 + $0x238] ss:$28 sps:$4 sm:$0xff]   ;;  %v6306_v17 = vld [vmem:[#allocation6 + $0x204] ss:$28 sps:$4 sm:$0xff]  }
 0x38b   : > { %4459 = vmatprep.mubr.bf16.mxu0 %v6908_v18  ;;  %4500 = vmatprep.mubr.bf16.mxu1 %v6910_v19  ;;  %v6301_v14 = vld [vmem:[#allocation6 + $0x5b8] ss:$28 sps:$4 sm:$0xff]  }
 0x38c   : > { %4460 = vmatmul.mubr.bf16.vlgmr.msra.gmra.mxu0 %v6912_v26  ;;  %4501 = vmatmul.mubr.bf16.vlgmr.msra.gmra.mxu1 %v6914_v27 }
 0x38d   : > { %4510 = vmatpush1.bf16.msra.mxu0 %v6220_v22  ;;  %4551 = vmatpush1.bf16.msra.mxu1 %v6223_v25  ;;  %v6309_v22 = vld [vmem:[#allocation6 + $0x584] ss:$28 sps:$4 sm:$0xff]  }
 0x38e   : > { %4541 = vmatprep.mubr.bf16.mxu0 %v6908_v18  ;;  %4582 = vmatprep.mubr.bf16.mxu1 %v6910_v19  ;;  %v6304_v25 = vld [vmem:[#allocation6 + $0x200] ss:$28 sps:$4 sm:$0xff]  }
 0x38f   : > { %4511 = vmatprep.subr.bf16.mxu0 %v6228_v20  ;;  %4552 = vmatprep.subr.bf16.mxu1 %v6231_v21  ;;  %v6307_v20 = vld [vmem:[#allocation6 + $0x580] ss:$28 sps:$4 sm:$0xff]   ;;  %v6312_v21 = vld [vmem:[#allocation6 + $0x1cc] ss:$28 sps:$4 sm:$0xff]  }
 0x391   : > { %4512 = vmatpush1.bf16.msra.mxu0 %v6226_v23  ;;  %4553 = vmatpush1.bf16.msra.mxu1 %v6229_v28  ;;  %v6315_v23 = vld [vmem:[#allocation6 + $0x54c] ss:$28 sps:$4 sm:$0xff]  }
 0x392   : > { %4513 = vmatprep.subr.bf16.mxu0 %v6234_v24  ;;  %4554 = vmatprep.subr.bf16.mxu1 %v6237_v29  ;;  %v6310_v28 = vld [vmem:[#allocation6 + $0x1c8] ss:$28 sps:$4 sm:$0xff]   ;;  %v6318_v29 = vld [vmem:[#allocation6 + $0x19c] ss:$28 sps:$4 sm:$0xff]  }
 0x393   : > { %v6313_v24 = vld [vmem:[#allocation6 + $0x548] ss:$28 sps:$4 sm:$0xff]  }
 0x395   : > { %4514 = vmatpush1.bf16.msra.mxu0 %v6232_v30  ;;  %4555 = vmatpush1.bf16.msra.mxu1 %v6235_v31  ;;  %v6321_v30 = vld [vmem:[#allocation6 + $0x51c] ss:$28 sps:$4 sm:$0xff]  }
 0x396   : > { %4515 = vmatprep.subr.bf16.mxu0 %v6240_v32  ;;  %4556 = vmatprep.subr.bf16.mxu1 %v6243_v33  ;;  %v6316_v31 = vld [vmem:[#allocation6 + $0x198] ss:$28 sps:$4 sm:$0xff]   ;;  %v6324_v33 = vld [vmem:[#allocation6 + $0x164] ss:$28 sps:$4 sm:$0xff]  }
 0x397   : > { %v6319_v32 = vld [vmem:[#allocation6 + $0x518] ss:$28 sps:$4 sm:$0xff]  }
 0x399   : > { %4516 = vmatpush1.bf16.msra.mxu0 %v6238_v51  ;;  %4557 = vmatpush1.bf16.msra.mxu1 %v6241_v36  ;;  %v6327_v51 = vld [vmem:[#allocation6 + $0x4e4] ss:$28 sps:$4 sm:$0xff]  }
 0x39a   : > { %4517 = vmatprep.subr.bf16.mxu0 %v6246_v37  ;;  %4558 = vmatprep.subr.bf16.mxu1 %v6249_v38  ;;  %v6322_v36 = vld [vmem:[#allocation6 + $0x160] ss:$28 sps:$4 sm:$0xff]   ;;  %v6330_v38 = vld [vmem:[#allocation6 + $0x12c] ss:$28 sps:$4 sm:$0xff]  }
 0x39b   : > { %v6325_v37 = vld [vmem:[#allocation6 + $0x4e0] ss:$28 sps:$4 sm:$0xff]  }
 0x39d   : > { %4518 = vmatpush1.bf16.msra.mxu0 %v6244_v39  ;;  %4559 = vmatpush1.bf16.msra.mxu1 %v6247_v40  ;;  %v6333_v39 = vld [vmem:[#allocation6 + $0x4ac] ss:$28 sps:$4 sm:$0xff]  }
 0x39e   : > { %4519 = vmatprep.subr.bf16.mxu0 %v6252_v41  ;;  %4560 = vmatprep.subr.bf16.mxu1 %v6255_v42  ;;  %v6328_v40 = vld [vmem:[#allocation6 + $0x128] ss:$28 sps:$4 sm:$0xff]   ;;  %v6336_v42 = vld [vmem:[#allocation6 + $0xf4] ss:$28 sps:$4 sm:$0xff]  }
 0x39f   : > { %v6331_v41 = vld [vmem:[#allocation6 + $0x4a8] ss:$28 sps:$4 sm:$0xff]  }
 0x3a1   : > { %4520 = vmatpush1.bf16.msra.mxu0 %v6250_v43  ;;  %4561 = vmatpush1.bf16.msra.mxu1 %v6253_v44  ;;  %v6339_v43 = vld [vmem:[#allocation6 + $0x474] ss:$28 sps:$4 sm:$0xff]  }
 0x3a2   : > { %4521 = vmatprep.subr.bf16.mxu0 %v6258_v45  ;;  %4562 = vmatprep.subr.bf16.mxu1 %v6261_v46  ;;  %v6334_v44 = vld [vmem:[#allocation6 + $0xf0] ss:$28 sps:$4 sm:$0xff]   ;;  %v6342_v46 = vld [vmem:[#allocation6 + $0xbc] ss:$28 sps:$4 sm:$0xff]  }
 0x3a3   : > { %v6337_v45 = vld [vmem:[#allocation6 + $0x470] ss:$28 sps:$4 sm:$0xff]  }
 0x3a5   : > { %4522 = vmatpush1.bf16.msra.mxu0 %v6256_v48  ;;  %4563 = vmatpush1.bf16.msra.mxu1 %v6259_v49  ;;  %v6345_v48 = vld [vmem:[#allocation6 + $0x43c] ss:$28 sps:$4 sm:$0xff]  }
 0x3a6   : > { %4523 = vmatprep.subr.bf16.mxu0 %v6264_v50  ;;  %4564 = vmatprep.subr.bf16.mxu1 %v6267_v52  ;;  %v6340_v49 = vld [vmem:[#allocation6 + $0xb8] ss:$28 sps:$4 sm:$0xff]   ;;  %v6348_v52 = vld [vmem:[#allocation6 + $0x84] ss:$28 sps:$4 sm:$0xff]  }
 0x3a7   : > { %v6343_v50 = vld [vmem:[#allocation6 + $0x438] ss:$28 sps:$4 sm:$0xff]  }
 0x3a9   : > { %4524 = vmatpush1.bf16.msra.mxu0 %v6262_v53  ;;  %4565 = vmatpush1.bf16.msra.mxu1 %v6265_v54  ;;  %v6351_v53 = vld [vmem:[#allocation6 + $0x404] ss:$28 sps:$4 sm:$0xff]  }
 0x3aa   : > { %4525 = vmatprep.subr.bf16.mxu0 %v6270_v55  ;;  %4566 = vmatprep.subr.bf16.mxu1 %v6273_v56  ;;  %v6346_v54 = vld [vmem:[#allocation6 + $0x80] ss:$28 sps:$4 sm:$0xff]   ;;  %v6354_v56 = vld [vmem:[#allocation6 + $0x4c] ss:$28 sps:$4 sm:$0xff]  }
 0x3ab   : > { %v6349_v55 = vld [vmem:[#allocation6 + $0x400] ss:$28 sps:$4 sm:$0xff]  }
 0x3ad   : > { %4526 = vmatpush2.bf16.msra.mxu0 %v6268_v57  ;;  %4567 = vmatpush2.bf16.msra.mxu1 %v6271_v58  ;;  %v6357_v57 = vld [vmem:[#allocation6 + $0x3cc] ss:$28 sps:$4 sm:$0xff]  }
 0x3ae   : > { %4527 = vmatprep.subr.bf16.mxu0 %v6276_v59  ;;  %4568 = vmatprep.subr.bf16.mxu1 %v6279_v60  ;;  %v6352_v58 = vld [vmem:[#allocation6 + $0x48] ss:$28 sps:$4 sm:$0xff]   ;;  %v6360_v60 = vld [vmem:[#allocation6 + $0x14] ss:$28 sps:$4 sm:$0xff]  }
 0x3af   : > { %v6355_v59 = vld [vmem:[#allocation6 + $0x3c8] ss:$28 sps:$4 sm:$0xff]  }
 0x3b1   : > { %4528 = vmatpush2.bf16.msra.mxu0 %v6274_v61  ;;  %4569 = vmatpush2.bf16.msra.mxu1 %v6277_v62  ;;  %v6363_v61 = vld [vmem:[#allocation6 + $0x394] ss:$28 sps:$4 sm:$0xff]  }
 0x3b2   : > { %4529 = vmatprep.subr.bf16.mxu0 %v6282_v47  ;;  %4570 = vmatprep.subr.bf16.mxu1 %v6285_v6  ;;  %v6358_v62 = vld [vmem:[#allocation6 + $0x10] ss:$28 sps:$4 sm:$0xff]   ;;  %v6366_v6 = vld [vmem:[#allocation6 + $0x35c] ss:$28 sps:$4 sm:$0xff]  }
 0x3b3   : > { %v6361_v47 = vld [vmem:[#allocation6 + $0x390] ss:$28 sps:$4 sm:$0xff]  }
 0x3b5   : > { %4530 = vmatpush2.bf16.msra.mxu0 %v6280_v16  ;;  %4571 = vmatpush2.bf16.msra.mxu1 %v6283_v63  ;;  %v6369_v16 = vld [vmem:[#allocation6 + $0x6dc] ss:$28 sps:$4 sm:$0xff]  }
 0x3b6   : > { %4531 = vmatprep.subr.bf16.mxu0 %v6288_v1  ;;  %4572 = vmatprep.subr.bf16.mxu1 %v6291_v3  ;;  %v6364_v63 = vld [vmem:[#allocation6 + $0x358] ss:$28 sps:$4 sm:$0xff]   ;;  %v6372_v3 = vld [vmem:[#allocation6 + $0x324] ss:$28 sps:$4 sm:$0xff]  }
 0x3b7   : > { %v6367_v1 = vld [vmem:[#allocation6 + $0x6d8] ss:$28 sps:$4 sm:$0xff]  }
 0x3b9   : > { %4532 = vmatpush2.bf16.msra.mxu0 %v6286_v4  ;;  %4573 = vmatpush2.bf16.msra.mxu1 %v6289_v35  ;;  %v6375_v4 = vld [vmem:[#allocation6 + $0x6a4] ss:$28 sps:$4 sm:$0xff]  }
 0x3ba   : > { %4533 = vmatprep.subr.bf16.mxu0 %v6294_v5  ;;  %4574 = vmatprep.subr.bf16.mxu1 %v6297_v8  ;;  %v6370_v35 = vld [vmem:[#allocation6 + $0x320] ss:$28 sps:$4 sm:$0xff]   ;;  %v6378_v8 = vld [vmem:[#allocation6 + $0x2ec] ss:$28 sps:$4 sm:$0xff]  }
 0x3bb   : > { %v6373_v5 = vld [vmem:[#allocation6 + $0x6a0] ss:$28 sps:$4 sm:$0xff]  }
 0x3bd   : > { %4534 = vmatpush2.bf16.msra.mxu0 %v6292_v9  ;;  %4575 = vmatpush2.bf16.msra.mxu1 %v6295_v10  ;;  %v6381_v9 = vld [vmem:[#allocation6 + $0x66c] ss:$28 sps:$4 sm:$0xff]  }
 0x3be   : > { %4535 = vmatprep.subr.bf16.mxu0 %v6300_v11  ;;  %4576 = vmatprep.subr.bf16.mxu1 %v6303_v12  ;;  %v6376_v10 = vld [vmem:[#allocation6 + $0x2e8] ss:$28 sps:$4 sm:$0xff]   ;;  %v6384_v12 = vld [vmem:[#allocation6 + $0x2b4] ss:$28 sps:$4 sm:$0xff]  }
 0x3bf   : > { %v6379_v11 = vld [vmem:[#allocation6 + $0x668] ss:$28 sps:$4 sm:$0xff]  }
 0x3c1   : > { %4536 = vmatpush2.bf16.msra.mxu0 %v6298_v13  ;;  %4577 = vmatpush2.bf16.msra.mxu1 %v6301_v14  ;;  %v6387_v13 = vld [vmem:[#allocation6 + $0x634] ss:$28 sps:$4 sm:$0xff]  }
 0x3c2   : > { %4537 = vmatprep.subr.bf16.mxu0 %v6306_v17  ;;  %4578 = vmatprep.subr.bf16.mxu1 %v6309_v22  ;;  %v6382_v14 = vld [vmem:[#allocation6 + $0x2b0] ss:$28 sps:$4 sm:$0xff]   ;;  %v6390_v22 = vld [vmem:[#allocation6 + $0x27c] ss:$28 sps:$4 sm:$0xff]  }
 0x3c3   : > { %v6385_v17 = vld [vmem:[#allocation6 + $0x630] ss:$28 sps:$4 sm:$0xff]  }
 0x3c5   : > { %4538 = vmatpush2.bf16.msra.mxu0 %v6304_v25  ;;  %4579 = vmatpush2.bf16.msra.mxu1 %v6307_v20  ;;  %v6393_v25 = vld [vmem:[#allocation6 + $0x5fc] ss:$28 sps:$4 sm:$0xff]  }
 0x3c6   : > { %4539 = vmatprep.subr.bf16.mxu0 %v6312_v21  ;;  %4580 = vmatprep.subr.bf16.mxu1 %v6315_v23  ;;  %v6388_v20 = vld [vmem:[#allocation6 + $0x278] ss:$28 sps:$4 sm:$0xff]   ;;  %v6396_v23 = vld [vmem:[#allocation6 + $0x244] ss:$28 sps:$4 sm:$0xff]  }
 0x3c7   : > { %v6391_v21 = vld [vmem:[#allocation6 + $0x5f8] ss:$28 sps:$4 sm:$0xff]  }
 0x3c9   : > { %4540 = vmatpush2.bf16.msra.mxu0 %v6310_v28  ;;  %4581 = vmatpush2.bf16.msra.mxu1 %v6313_v24  ;;  %v6399_v28 = vld [vmem:[#allocation6 + $0x5c4] ss:$28 sps:$4 sm:$0xff]  }
 0x3ca   : > { %4591 = vmatprep.subr.bf16.mxu0 %v6318_v29  ;;  %4632 = vmatprep.subr.bf16.mxu1 %v6321_v30  ;;  %v6394_v24 = vld [vmem:[#allocation6 + $0x240] ss:$28 sps:$4 sm:$0xff]   ;;  %v6402_v30 = vld [vmem:[#allocation6 + $0x20c] ss:$28 sps:$4 sm:$0xff]  }
 0x3cb   : > { %v6397_v29 = vld [vmem:[#allocation6 + $0x5c0] ss:$28 sps:$4 sm:$0xff]  }
 0x3cc   : > { %4542 = vmatmul.mubr.bf16.vlgmr.msra.gmra.mxu0 %v6912_v26  ;;  %4583 = vmatmul.mubr.bf16.vlgmr.msra.gmra.mxu1 %v6914_v27 }
 0x3cd   : > { %4592 = vmatpush1.bf16.msra.mxu0 %v6316_v31  ;;  %4623 = vmatprep.mubr.bf16.mxu0 %v6908_v18  ;;  %v6405_v31 = vld [vmem:[#allocation6 + $0x58c] ss:$28 sps:$4 sm:$0xff]  }
 0x3ce   : > { %4633 = vmatpush1.bf16.msra.mxu1 %v6319_v32  ;;  %4664 = vmatprep.mubr.bf16.mxu1 %v6910_v19  ;;  %v6400_v32 = vld [vmem:[#allocation6 + $0x208] ss:$28 sps:$4 sm:$0xff]  }
 0x3cf   : > { %4593 = vmatprep.subr.bf16.mxu0 %v6324_v33  ;;  %4634 = vmatprep.subr.bf16.mxu1 %v6327_v51  ;;  %v6403_v33 = vld [vmem:[#allocation6 + $0x588] ss:$28 sps:$4 sm:$0xff]   ;;  %v6408_v51 = vld [vmem:[#allocation6 + $0x1d4] ss:$28 sps:$4 sm:$0xff]  }
 0x3d1   : > { %4594 = vmatpush1.bf16.msra.mxu0 %v6322_v36  ;;  %v6411_v36 = vld [vmem:[#allocation6 + $0x554] ss:$28 sps:$4 sm:$0xff]  }
 0x3d2   : > { %4635 = vmatpush1.bf16.msra.mxu1 %v6325_v37  ;;  %4595 = vmatprep.subr.bf16.mxu0 %v6330_v38  ;;  %v6406_v37 = vld [vmem:[#allocation6 + $0x1d0] ss:$28 sps:$4 sm:$0xff]  }
 0x3d3   : > { %4636 = vmatprep.subr.bf16.mxu1 %v6333_v39  ;;  %v6409_v38 = vld [vmem:[#allocation6 + $0x550] ss:$28 sps:$4 sm:$0xff]   ;;  %v6412_v39 = vld [vmem:[#allocation6 + $0x360] ss:$28 sps:$4 sm:$0xff]  }
 0x3d5   : > { %4596 = vmatpush1.bf16.msra.mxu0 %v6328_v40  ;;  %v6413_v40 = vld [vmem:[#allocation6 + $0x6e0] ss:$28 sps:$4 sm:$0xff]  }
 0x3d6   : > { %4637 = vmatpush1.bf16.msra.mxu1 %v6331_v41  ;;  %4597 = vmatprep.subr.bf16.mxu0 %v6336_v42  ;;  %v6414_v41 = vld [vmem:[#allocation6 + $0x1a0] ss:$28 sps:$4 sm:$0xff]  }
 0x3d7   : > { %4638 = vmatprep.subr.bf16.mxu1 %v6339_v43  ;;  %v6415_v42 = vld [vmem:[#allocation6 + $0x520] ss:$28 sps:$4 sm:$0xff]   ;;  %v6416_v43 = vld [vmem:[#allocation6 + $0x328] ss:$28 sps:$4 sm:$0xff]  }
 0x3d9   : > { %4598 = vmatpush1.bf16.msra.mxu0 %v6334_v44  ;;  %v6417_v44 = vld [vmem:[#allocation6 + $0x6a8] ss:$28 sps:$4 sm:$0xff]  }
 0x3da   : > { %4639 = vmatpush1.bf16.msra.mxu1 %v6337_v45  ;;  %4599 = vmatprep.subr.bf16.mxu0 %v6342_v46  ;;  %v6418_v45 = vld [vmem:[#allocation6 + $0x168] ss:$28 sps:$4 sm:$0xff]  }
 0x3db   : > { %4640 = vmatprep.subr.bf16.mxu1 %v6345_v48  ;;  %v6419_v46 = vld [vmem:[#allocation6 + $0x4e8] ss:$28 sps:$4 sm:$0xff]   ;;  %v6420_v48 = vld [vmem:[#allocation6 + $0x2f0] ss:$28 sps:$4 sm:$0xff]  }
 0x3dd   : > { %4600 = vmatpush1.bf16.msra.mxu0 %v6340_v49  ;;  %v6421_v49 = vld [vmem:[#allocation6 + $0x670] ss:$28 sps:$4 sm:$0xff]  }
 0x3de   : > { %4641 = vmatpush1.bf16.msra.mxu1 %v6343_v50  ;;  %4601 = vmatprep.subr.bf16.mxu0 %v6348_v52  ;;  %v6422_v50 = vld [vmem:[#allocation6 + $0x130] ss:$28 sps:$4 sm:$0xff]  }
 0x3df   : > { %4642 = vmatprep.subr.bf16.mxu1 %v6351_v53  ;;  %v6423_v52 = vld [vmem:[#allocation6 + $0x4b0] ss:$28 sps:$4 sm:$0xff]   ;;  %v6424_v53 = vld [vmem:[#allocation6 + $0x2b8] ss:$28 sps:$4 sm:$0xff]  }
 0x3e1   : > { %4602 = vmatpush1.bf16.msra.mxu0 %v6346_v54  ;;  %v6425_v54 = vld [vmem:[#allocation6 + $0x638] ss:$28 sps:$4 sm:$0xff]  }
 0x3e2   : > { %4643 = vmatpush1.bf16.msra.mxu1 %v6349_v55  ;;  %4603 = vmatprep.subr.bf16.mxu0 %v6354_v56  ;;  %v6426_v55 = vld [vmem:[#allocation6 + $0xf8] ss:$28 sps:$4 sm:$0xff]   ;;  %v6428_v56 = vld [vmem:[#allocation6 + $0x280] ss:$28 sps:$4 sm:$0xff]  }
 0x3e3   : > { %4644 = vmatprep.subr.bf16.mxu1 %v6357_v57  ;;  %v6429_v57 = vld [vmem:[#allocation6 + $0x600] ss:$28 sps:$4 sm:$0xff]  }
 0x3e5   : > { %4604 = vmatpush1.bf16.msra.mxu0 %v6352_v58  ;;  %v6431_v58 = vld [vmem:[#allocation6 + $0x440] ss:$28 sps:$4 sm:$0xff]  }
 0x3e6   : > { %4645 = vmatpush1.bf16.msra.mxu1 %v6355_v59  ;;  %4605 = vmatprep.subr.bf16.mxu0 %v6360_v60  ;;  %v6432_v59 = vld [vmem:[#allocation6 + $0x248] ss:$28 sps:$4 sm:$0xff]  }
 0x3e7   : > { %4646 = vmatprep.subr.bf16.mxu1 %v6363_v61  ;;  %v6433_v60 = vld [vmem:[#allocation6 + $0x5c8] ss:$28 sps:$4 sm:$0xff]  }
 0x3e8   : > { %v6434_v61 = vld [vmem:[#allocation6 + $0x88] ss:$28 sps:$4 sm:$0xff]  }
 0x3e9   : > { %4606 = vmatpush1.bf16.msra.mxu0 %v6358_v62  ;;  %v6435_v62 = vld [vmem:[#allocation6 + $0x408] ss:$28 sps:$4 sm:$0xff]  }
 0x3ea   : > { %4647 = vmatpush1.bf16.msra.mxu1 %v6361_v47  ;;  %4607 = vmatprep.subr.bf16.mxu0 %v6366_v6  ;;  %v6436_v47 = vld [vmem:[#allocation6 + $0x210] ss:$28 sps:$4 sm:$0xff]  }
 0x3eb   : > { %4648 = vmatprep.subr.bf16.mxu1 %v6369_v16  ;;  %v6437_v6 = vld [vmem:[#allocation6 + $0x590] ss:$28 sps:$4 sm:$0xff]  }
 0x3ec   : > { %v6438_v16 = vld [vmem:[#allocation6 + $0x50] ss:$28 sps:$4 sm:$0xff]  }
 0x3ed   : > { %4608 = vmatpush2.bf16.msra.mxu0 %v6364_v63  ;;  %v6439_v63 = vld [vmem:[#allocation6 + $0x3d0] ss:$28 sps:$4 sm:$0xff]  }
 0x3ee   : > { %4649 = vmatpush2.bf16.msra.mxu1 %v6367_v1  ;;  %4609 = vmatprep.subr.bf16.mxu0 %v6372_v3  ;;  %v6440_v1 = vld [vmem:[#allocation6 + $0x1d8] ss:$28 sps:$4 sm:$0xff]  }
 0x3ef   : > { %4650 = vmatprep.subr.bf16.mxu1 %v6375_v4  ;;  %v6441_v3 = vld [vmem:[#allocation6 + $0x558] ss:$28 sps:$4 sm:$0xff]  }
 0x3f0   : > { %v6442_v4 = vld [vmem:[#allocation6 + $0x18] ss:$28 sps:$4 sm:$0xff]  }
 0x3f1   : > { %4610 = vmatpush2.bf16.msra.mxu0 %v6370_v35  ;;  %v6443_v35 = vld [vmem:[#allocation6 + $0x398] ss:$28 sps:$4 sm:$0xff]  }
 0x3f2   : > { %4651 = vmatpush2.bf16.msra.mxu1 %v6373_v5  ;;  %4611 = vmatprep.subr.bf16.mxu0 %v6378_v8  ;;  %v6935_v5 = vld [vmem:[%s6974_s9] sm:$0xff] }
 0x3f3   : > { %4652 = vmatprep.subr.bf16.mxu1 %v6381_v9  ;;  %v3243_v8 = vrot.slane %v6935_v5, %v6768_v0  ;;  %v3247_v9 = vrot.slane %v6935_v5, %v6774_v2 }
 0x3f5   : > { %4612 = vmatpush2.bf16.msra.mxu0 %v6376_v10 }
 0x3f6   : > { %4653 = vmatpush2.bf16.msra.mxu1 %v6379_v11  ;;  %4613 = vmatprep.subr.bf16.mxu0 %v6384_v12 }
 0x3f7   : > { %4654 = vmatprep.subr.bf16.mxu1 %v6387_v13 }
 0x3f9   : > { %4614 = vmatpush2.bf16.msra.mxu0 %v6382_v14 }
 0x3fa   : > { %4655 = vmatpush2.bf16.msra.mxu1 %v6385_v17  ;;  %4615 = vmatprep.subr.bf16.mxu0 %v6390_v22 }
 0x3fb   : > { %4656 = vmatprep.subr.bf16.mxu1 %v6393_v25 }
 0x3fd   : > { %4616 = vmatpush2.bf16.msra.mxu0 %v6388_v20 }
 0x3fe   : > { %4657 = vmatpush2.bf16.msra.mxu1 %v6391_v21  ;;  %4617 = vmatprep.subr.bf16.mxu0 %v6396_v23 }
 0x3ff   : > { %4658 = vmatprep.subr.bf16.mxu1 %v6399_v28 }
 0x401   : > { %4618 = vmatpush2.bf16.msra.mxu0 %v6394_v24 }
 0x402   : > { %4659 = vmatpush2.bf16.msra.mxu1 %v6397_v29  ;;  %4619 = vmatprep.subr.bf16.mxu0 %v6402_v30 }
 0x403   : > { %4660 = vmatprep.subr.bf16.mxu1 %v6405_v31 }
 0x405   : > { %4620 = vmatpush2.bf16.msra.mxu0 %v6400_v32 }
 0x406   : > { %4661 = vmatpush2.bf16.msra.mxu1 %v6403_v33  ;;  %4621 = vmatprep.subr.bf16.mxu0 %v6408_v51  ;;  %v3251_v33 = vrot.slane %v6935_v5, %v6793_v7  ;;  %v3255_v51 = vrot.slane %v6935_v5, %v6796_v34 }
 0x407   : > { %4662 = vmatprep.subr.bf16.mxu1 %v6411_v36 }
 0x409   : > { %4622 = vmatpush2.bf16.msra.mxu0 %v6406_v37 }
 0x40a   : > { %4663 = vmatpush2.bf16.msra.mxu1 %v6409_v38  ;;  %5546 = vmatprep.subr.bf16.mxu0 %v6412_v39 }
 0x40b   : > { %5568 = vmatprep.subr.bf16.mxu1 %v6413_v40 }
 0x40c   : > { %4624 = vmatmul.mubr.bf16.vlgmr.msra.gmra.mxu0 %v6912_v26 }
 0x40d   : > { %4665 = vmatmul.mubr.bf16.vlgmr.msra.gmra.mxu1 %v6914_v27  ;;  %5547 = vmatpush3.bf16.msra.mxu0 %v6414_v41 }
 0x40e   : > { %4705 = vmatprep.mubr.bf16.mxu0 %v6908_v18  ;;  %5569 = vmatpush3.bf16.msra.mxu1 %v6415_v42  ;;  %v6427_v18 = vld [vmem:[#allocation6 + $0x478] ss:$28 sps:$4 sm:$0xff]  }
 0x40f   : > { %4745 = vmatprep.mubr.bf16.mxu1 %v6910_v19  ;;  %5548 = vmatprep.subr.bf16.mxu0 %v6416_v43  ;;  %v6430_v19 = vld [vmem:[#allocation6 + $0xc0] ss:$28 sps:$4 sm:$0xff]  }
 0x410   : > { %5570 = vmatprep.subr.bf16.mxu1 %v6417_v44 }
 0x411   : > { %5549 = vmatpush3.bf16.msra.mxu0 %v6418_v45 }
 0x412   : > { %5571 = vmatpush3.bf16.msra.mxu1 %v6419_v46  ;;  %5550 = vmatprep.subr.bf16.mxu0 %v6420_v48 }
 0x413   : > { %5572 = vmatprep.subr.bf16.mxu1 %v6421_v49 }
 0x415   : > { %5551 = vmatpush3.bf16.msra.mxu0 %v6422_v50 }
 0x416   : > { %5573 = vmatpush3.bf16.msra.mxu1 %v6423_v52  ;;  %5552 = vmatprep.subr.bf16.mxu0 %v6424_v53 }
 0x417   : > { %5574 = vmatprep.subr.bf16.mxu1 %v6425_v54 }
 0x419   : > { %5553 = vmatpush3.bf16.msra.mxu0 %v6426_v55 }
 0x41a   : > { %5575 = vmatpush3.bf16.msra.mxu1 %v6427_v18  ;;  %5554 = vmatprep.subr.bf16.mxu0 %v6428_v56  ;;  %v3258_v56 = vsub.s32 4, %v6765_v15 }
 0x41b   : > { %5576 = vmatprep.subr.bf16.mxu1 %v6429_v57  ;;  %v3262_v57 = vsub.s32 5, %v6765_v15 }
 0x41d   : > { %5555 = vmatpush3.bf16.msra.mxu0 %v6430_v19  ;;  %v3259_v19 = vrot.slane %v6935_v5, %v3258_v56 }
 0x41e   : > { %5577 = vmatpush3.bf16.msra.mxu1 %v6431_v58  ;;  %5556 = vmatprep.subr.bf16.mxu0 %v6432_v59  ;;  %v3263_v58 = vrot.slane %v6935_v5, %v3262_v57 }
 0x41f   : > { %5578 = vmatprep.subr.bf16.mxu1 %v6433_v60 }
 0x421   : > { %5557 = vmatpush3.bf16.msra.mxu0 %v6434_v61 }
 0x422   : > { %5579 = vmatpush3.bf16.msra.mxu1 %v6435_v62  ;;  %5558 = vmatprep.subr.bf16.mxu0 %v6436_v47 }
 0x423   : > { %5580 = vmatprep.subr.bf16.mxu1 %v6437_v6 }
 0x425   : > { %5559 = vmatpush3.bf16.msra.mxu0 %v6438_v16 }
 0x426   : > { %5581 = vmatpush3.bf16.msra.mxu1 %v6439_v63  ;;  %5560 = vmatprep.subr.bf16.mxu0 %v6440_v1 }
 0x427   : > { %5582 = vmatprep.subr.bf16.mxu1 %v6441_v3 }
 0x429   : > { %5561 = vmatpush3.bf16.msra.mxu0 %v6442_v4 }
 0x42a   : > { %5583 = vmatpush3.bf16.msra.mxu1 %v6443_v35 }
 0x42c   : > { %4706 = vmatmul.mubr.bf16.vlgmr.msra.gmra.mxu0 %v6912_v26 }
 0x42d   : > { %4746 = vmatmul.mubr.bf16.vlgmr.msra.gmra.mxu1 %v6914_v27 }
 0x44c   : > { %v4461_v10 = vpop.f32.mrf.mxu0  ;;  %v4502_v11 = vpop.f32.mrf.mxu1 }
 0x44d   : > { %v4462_v12 = vadd.f32 %v4461_v10, %v3243_v8 }
 0x44e   : > { %v4463_v13 = vpop.f32.mrf.mxu0  ;;  %v4504_v14 = vpop.f32.mrf.mxu1 }
 0x44f   : > { %v4503_v17 = vadd.f32 %v4502_v11, %v4462_v12  ;;  %v4464_v26 = vadd.f32 %v4463_v13, %v3247_v9 }
 0x450   : > { %v4465_v22 = vpop.f32.mrf.mxu0  ;;  %v4506_v27 = vpop.f32.mrf.mxu1 }
 0x451   : > { %v5528_v25 = vmul.f32 -1.442695, %v4503_v17  ;;  %v4505_v20 = vadd.f32 %v4504_v14, %v4464_v26  ;;  %v3266_v14 = vsub.s32 6, %v6765_v15 }
 0x452   : > { %v4466_v21 = vpop.f32.mrf.mxu0  ;;  %v4507_v23 = vpop.f32.mrf.mxu1 }
 0x453   : > { %6446 = vpow2.f32 %v5528_v25  ;;  %v5529_v28 = vmul.f32 -1.442695, %v4505_v20  ;;  %v3267_v22 = vrot.slane %v6935_v5, %v3266_v14 }
 0x455   : > { %6448 = vpow2.f32 %v5529_v28 }
 0x460   : > { %v6447_v0 = vpop.eup %6446 }
 0x461   : > { %v4774_v24 = vadd.f32 1.0, %v6447_v0 }
 0x462   : > { %v6449_v2 = vpop.eup %6448 }
 0x463   : > { %v4775_v29 = vadd.f32 1.0, %v6449_v2  ;;  %6450 = vrcp.f32 %v4774_v24 }
 0x465   : > { %6452 = vrcp.f32 %v4775_v29 }
 0x470   : > { %v6451_v30 = vpop.eup %6450 }
 0x472   : > { %v6453_v31 = vpop.eup %6452 }
 0x473   : > { %v5542_v32 = vpack.c.bf16 %v6453_v31, %v6451_v30 }
 0x475   : > { %4824 = vst [vmem:[%s6946_s12] sm:$0xff] %v5542_v32 }
 0x48c   : > { %v4543_v36 = vpop.f32.mrf.mxu0  ;;  %v4584_v37 = vpop.f32.mrf.mxu1 }
 0x48d   : > { %v4544_v38 = vadd.f32 %v4543_v36, %v3251_v33 }
 0x48e   : > { %v4545_v39 = vpop.f32.mrf.mxu0  ;;  %v4586_v40 = vpop.f32.mrf.mxu1 }
 0x48f   : > { %v4585_v41 = vadd.f32 %v4584_v37, %v4544_v38  ;;  %v4546_v42 = vadd.f32 %v4545_v39, %v3255_v51 }
 0x490   : > { %v4547_v43 = vpop.f32.mrf.mxu0  ;;  %v4588_v44 = vpop.f32.mrf.mxu1 }
 0x491   : > { %v5530_v45 = vmul.f32 -1.442695, %v4585_v41  ;;  %v4587_v46 = vadd.f32 %v4586_v40, %v4546_v42 }
 0x492   : > { %v4548_v48 = vpop.f32.mrf.mxu0  ;;  %v4589_v49 = vpop.f32.mrf.mxu1 }
 0x493   : > { %6454 = vpow2.f32 %v5530_v45  ;;  %v5531_v50 = vmul.f32 -1.442695, %v4587_v46 }
 0x495   : > { %6456 = vpow2.f32 %v5531_v50 }
 0x4a0   : > { %v6455_v7 = vpop.eup %6454 }
 0x4a1   : > { %v4776_v52 = vadd.f32 1.0, %v6455_v7 }
 0x4a2   : > { %v6457_v34 = vpop.eup %6456 }
 0x4a3   : > { %v4777_v53 = vadd.f32 1.0, %v6457_v34  ;;  %6458 = vrcp.f32 %v4776_v52 }
 0x4a5   : > { %6460 = vrcp.f32 %v4777_v53 }
 0x4b0   : > { %v6459_v54 = vpop.eup %6458 }
 0x4b2   : > { %v6461_v55 = vpop.eup %6460 }
 0x4b3   : > { %v5543_v18 = vpack.c.bf16 %v6461_v55, %v6459_v54 }
 0x4b5   : > { %4825 = vst [vmem:[%s6946_s12 + $0x8] sm:$0xff] %v5543_v18 }
 0x4cc   : > { %v4625_v59 = vpop.f32.mrf.mxu0 }
 0x4cd   : > { %v4626_v60 = vadd.f32 %v4625_v59, %v3259_v19  ;;  %v4666_v61 = vpop.f32.mrf.mxu1 }
 0x4ce   : > { %v4627_v62 = vpop.f32.mrf.mxu0 }
 0x4cf   : > { %v4667_v47 = vadd.f32 %v4666_v61, %v4626_v60  ;;  %v4628_v6 = vadd.f32 %v4627_v62, %v3263_v58  ;;  %v4668_v16 = vpop.f32.mrf.mxu1 }
 0x4d0   : > { %v4629_v63 = vpop.f32.mrf.mxu0 }
 0x4d1   : > { %v5532_v1 = vmul.f32 -1.442695, %v4667_v47  ;;  %v4669_v3 = vadd.f32 %v4668_v16, %v4628_v6  ;;  %v4670_v4 = vpop.f32.mrf.mxu1 }
 0x4d2   : > { %v4630_v35 = vpop.f32.mrf.mxu0 }
 0x4d3   : > { %6462 = vpow2.f32 %v5532_v1  ;;  %v5533_v8 = vmul.f32 -1.442695, %v4669_v3  ;;  %v4671_v9 = vpop.f32.mrf.mxu1 }
 0x4d5   : > { %6464 = vpow2.f32 %v5533_v8 }
 0x4e0   : > { %v6463_v10 = vpop.eup %6462 }
 0x4e1   : > { %v4778_v11 = vadd.f32 1.0, %v6463_v10 }
 0x4e2   : > { %v6465_v12 = vpop.eup %6464 }
 0x4e3   : > { %v4779_v13 = vadd.f32 1.0, %v6465_v12  ;;  %6466 = vrcp.f32 %v4778_v11 }
 0x4e5   : > { %6468 = vrcp.f32 %v4779_v13 }
 0x4ec   : > { %v5562_v17 = vpop.f32.mrf.mxu0 }
 0x4ed   : > { %v5584_v26 = vpop.f32.mrf.mxu1 }
 0x4ee   : > { %v5563_v27 = vpop.f32.mrf.mxu0 }
 0x4ef   : > { %v5564_v25 = vadd.f32 %v5563_v27, %v5562_v17  ;;  %v5585_v20 = vpop.f32.mrf.mxu1 }
 0x4f0   : > { %v5565_v21 = vpop.f32.mrf.mxu0  ;;  %v6467_v23 = vpop.eup %6466  ;;  %v5586_v0 = vadd.f32 %v5585_v20, %v5584_v26 }
 0x4f1   : > { %v4708_v28 = vadd.f32 %v5564_v25, %v3267_v22  ;;  %v5587_v24 = vpop.f32.mrf.mxu1 }
 0x4f2   : > { %v6469_v2 = vpop.eup %6468  ;;  %v5566_v29 = vpop.f32.mrf.mxu0 }
 0x4f3   : > { %v5544_v30 = vpack.c.bf16 %v6469_v2, %v6467_v23  ;;  %v4748_v31 = vadd.f32 %v5586_v0, %v4708_v28  ;;  %v5588_v32 = vpop.f32.mrf.mxu1 }
 0x4f5   : > { %4826 = vst [vmem:[%s6946_s12 + $0x10] sm:$0xff] %v5544_v30  ;;  %v5534_v15 = vmul.f32 -1.442695, %v4748_v31 }
 0x4f7   : > { %6470 = vpow2.f32 %v5534_v15 }
 0x504   : > { %v6471_v33 = vpop.eup %6470 }
 0x505   : > { %v4780_v51 = vadd.f32 1.0, %v6471_v33 }
 0x507   : > { %6472 = vrcp.f32 %v4780_v51 }
 0x514   : > { %v6473_v5 = vpop.eup %6472 }
 0x515   : > { %v5545_v36 = vpack.c.bf16 %v6473_v5, %v6473_v5 }
 0x517   : > { %4827 = vst [vmem:[%s6946_s12 + $0x18] sm:$0xf] %v5545_v36 }
 0x518 PF: > { %s24_s17 = sadd.s32 1, %s6567_s17  }
 0x519   : > { %p21_p3 = scmp.ge.s32.totalorder %s24_s17, 4  }
 0x51b   :  { %23 = sbr.rel (!%p21_p3) target bundleno = 2 (0x2), region = 118 }
 0x520   :  { %4867 = vsyncpa [#allocation3], 1 }
 0x521   :  { %4869 = vsyncpa [#allocation3 + $0x1], 1 }
 0x522   :  { %4870 = vsyncpa [#allocation5], 1 }

</bundles_post_ra>
